<compile_context>
chip_gen: v6e
topology: v6e:2x2x1
jax: 0.10.0
libtpu: 0.0.40
codegen_flags: <defaults>
</compile_context>

<pallas_src>
import functools

import jax
import jax.numpy as jnp
from jax.experimental import pallas as pl
from jax.experimental.pallas import tpu as pltpu


def _round_up(x, m):
    return ((x + m - 1) // m) * m


def _vmem_capacity_bytes():
    try:
        return int(pltpu.get_tpu_info().vmem_capacity_bytes)
    except Exception:
        return 64 << 20  # conservative: v7x per-TensorCore VMEM


def _weight_vmem_bytes(e, h, a):
    # Double-buffered constant blocks: W_enc^T + W_dec^T (bf16), fused bias + W_full (f32).
    return 2 * ((e + h) * a * 2 + 2 * a * 4) + 1024


def _per_batch_elem_vmem_bytes(n_pad, e, h, a, enc_itemsize):
    enc_tile = 2 * n_pad * e * enc_itemsize               # double-buffered encoder input
    enc_cast = n_pad * e * (2 if enc_itemsize == 4 else 4)  # bf16 cast / f32 working copy
    dec_tile = 2 * h * 4
    att1_h = 2 * n_pad * a * 4                            # att1 + relu intermediate
    outs = 2 * (e + n_pad) * 4                            # double-buffered outputs
    return enc_tile + enc_cast + dec_tile + att1_h + outs


def _choose_batch_tile(batch, n_pad, e, h, a, enc_itemsize, vmem_capacity):
    budget = int(vmem_capacity * 0.7)                     # headroom for pipeline/scratch
    per = _per_batch_elem_vmem_bytes(n_pad, e, h, a, enc_itemsize)
    tb = (budget - _weight_vmem_bytes(e, h, a)) // max(per, 1)
    tb = int(max(8, min(32, (tb // 8) * 8)))              # sublane-aligned, 8..32
    # Keep >= 2 grid steps so "parallel" can shard across both TensorCores on v7x
    # (costs nothing on single-TC v5e/v6e).
    while tb > 8 and -(-batch // tb) < 2:
        tb -= 8
    return tb


def attention_kernel(enc_ref, dec_ref, we_ref, wd_ref, bed_ref, wf_ref, bf_ref,
                     awe_ref, att_ref, *, n_valid):
    # enc_ref: (TB, N, E) f32/bf16   dec_ref: (TB, H) f32
    # we_ref : (E, A) bf16           wd_ref : (H, A) bf16
    # bed_ref: (1, A) f32 (= b_enc + b_dec)
    # wf_ref : (1, A) f32            bf_ref : (1, 1) f32 in SMEM
    TB, N, E = enc_ref.shape
    A = we_ref.shape[1]

    enc = enc_ref[...]                                    # (TB, N, E)
    dec = dec_ref[...]                                    # (TB, H)

    # encoder_att: one big (TB*N, E) x (E, A) bf16 MXU matmul, f32 accumulation.
    enc_bf = enc.astype(jnp.bfloat16)                     # no-op if input already bf16
    att1 = jnp.dot(enc_bf.reshape(TB * N, E), we_ref[...],
                   preferred_element_type=jnp.float32)    # (TB*N, A)
    # decoder_att: (TB, H) x (H, A)
    att2 = jnp.dot(dec.astype(jnp.bfloat16), wd_ref[...],
                   preferred_element_type=jnp.float32)    # (TB, A)

    # relu(att1 + att2.unsqueeze(1) + (b_enc + b_dec))    -> (TB, N, A)
    h = jnp.maximum(att1.reshape(TB, N, A)
                    + att2[:, None, :]
                    + bed_ref[...][None, :, :], 0.0)

    # full_att: width-1 projection as VPU multiply + lane reduce -> lane-dense (TB, N)
    att = jnp.sum(h * wf_ref[...][None, :, :], axis=-1) + bf_ref[0, 0]

    if n_valid < N:
        # Sequence axis was padded in the wrapper: mask padded lanes before the softmax.
        lane = jax.lax.broadcasted_iota(jnp.int32, (TB, N), 1)
        att = jnp.where(lane < n_valid, att, -jnp.inf)

    # softmax over N (last / lane axis)
    m = jnp.max(att, axis=-1, keepdims=True)              # (TB, 1)
    e = jnp.exp(att - m)                                  # (TB, N)
    alpha = e * pl.reciprocal(jnp.sum(e, axis=-1, keepdims=True), approx=True)

    # (encoder_out * alpha).sum(dim=1) -> (TB, E); f32 accumulation (bf16 enc promotes).
    # Stays on VPU/XLU: hidden under the HBM-bound encoder read.
    awe = jnp.sum(enc * alpha[:, :, None], axis=1)

    awe_ref[...] = awe.astype(awe_ref.dtype)              # (TB, E)  unmasked stores
    att_ref[...] = att                                    # (TB, N)  lane-dense logits


def attention_forward(encoder_out, decoder_hidden, params, *,
                      batch_tile=None, pad_seq=False, vmem_limit_bytes=None):
    """encoder_out: (B, N, E) f32 or bf16; decoder_hidden: (B, H) f32.

    Returns (attention_weighted_encoding (B, E), att logits (B, N)) — matching the
    PyTorch module's return values (pre-softmax logits, not the softmax weights).
    """
    B, N, E = encoder_out.shape
    H = decoder_hidden.shape[1]
    A = params["we"].shape[0]

    # Optional lane-dense sequence padding (masked to -inf inside the kernel).
    N_pad = _round_up(N, 128) if pad_seq else N
    if N_pad != N:
        encoder_out = jnp.pad(encoder_out, ((0, 0), (0, N_pad - N), (0, 0)))

    enc_itemsize = jnp.dtype(encoder_out.dtype).itemsize
    vmem_cap = _vmem_capacity_bytes()

    if batch_tile is None:
        TB = _choose_batch_tile(B, N_pad, E, H, A, enc_itemsize, vmem_cap)
    else:
        TB = max(8, _round_up(int(batch_tile), 8))        # keep sublane dim 8-aligned

    B_pad = _round_up(B, TB)
    if B_pad != B:
        pad = B_pad - B
        encoder_out = jnp.pad(encoder_out, ((0, pad), (0, 0), (0, 0)))
        decoder_hidden = jnp.pad(decoder_hidden, ((0, pad), (0, 0)))

    # Pre-transpose weights so the kernel does plain row-major matmuls; bf16 for the MXU.
    we_t = params["we"].T.astype(jnp.bfloat16)                              # (E, A)
    wd_t = params["wd"].T.astype(jnp.bfloat16)                              # (H, A)
    wf_row = params["wf"].reshape(1, A).astype(jnp.float32)                 # (1, A)
    bed = (params["be"] + params["bd"]).reshape(1, A).astype(jnp.float32)   # fused bias
    bf = params["bf"].reshape(1, 1).astype(jnp.float32)                     # scalar -> SMEM

    if vmem_limit_bytes is None:
        need = (_weight_vmem_bytes(E, H, A)
                + TB * _per_batch_elem_vmem_bytes(N_pad, E, H, A, enc_itemsize))
        need = int(need * 1.25) + (4 << 20)
        vmem_limit_bytes = int(min(max(need, 32 << 20), vmem_cap))

    kernel = functools.partial(attention_kernel, n_valid=N)

    grid_spec = pltpu.PrefetchScalarGridSpec(
        num_scalar_prefetch=0,
        grid=(B_pad // TB,),
        in_specs=[
            pl.BlockSpec((TB, N_pad, E), lambda b: (b, 0, 0)),   # encoder_out tile
            pl.BlockSpec((TB, H), lambda b: (b, 0)),             # decoder_hidden tile
            pl.BlockSpec((E, A), lambda b: (0, 0)),              # W_enc^T (bf16, const)
            pl.BlockSpec((H, A), lambda b: (0, 0)),              # W_dec^T (bf16, const)
            pl.BlockSpec((1, A), lambda b: (0, 0)),              # b_enc + b_dec
            pl.BlockSpec((1, A), lambda b: (0, 0)),              # W_full row
            pl.BlockSpec(memory_space=pltpu.MemorySpace.SMEM),   # b_full scalar
        ],
        out_specs=[
            pl.BlockSpec((TB, E), lambda b: (b, 0)),             # weighted encoding
            pl.BlockSpec((TB, N_pad), lambda b: (b, 0)),         # att logits (lane-dense)
        ],
    )

    awe, att = pl.pallas_call(
        kernel,
        out_shape=(
            jax.ShapeDtypeStruct((B_pad, E), jnp.float32),
            jax.ShapeDtypeStruct((B_pad, N_pad), jnp.float32),
        ),
        grid_spec=grid_spec,
        compiler_params=pltpu.CompilerParams(
            dimension_semantics=("parallel",),
            vmem_limit_bytes=vmem_limit_bytes),
    )(encoder_out, decoder_hidden, we_t, wd_t, bed, wf_row, bf)

    return awe[:B], att[:B, :N]


def attention_reference(encoder_out, decoder_hidden, params):
    att1 = encoder_out @ params["we"].T + params["be"]          # (B, N, A)
    att2 = decoder_hidden @ params["wd"].T + params["bd"]       # (B, A)
    h = jnp.maximum(att1 + att2[:, None, :], 0.0)
    att = (h @ params["wf"].T + params["bf"])[..., 0]           # (B, N)
    alpha = jax.nn.softmax(att, axis=1)
    awe = jnp.sum(encoder_out * alpha[..., None], axis=1)       # (B, E)
    return awe, att


if __name__ == "__main__":
    # Small shapes; B=12 exercises batch padding + a 2-step grid (TB=8).
    B, N, E, H, A = 12, 24, 64, 48, 32

    key = jax.random.PRNGKey(0)
    k_enc, k_dec, k_we, k_be, k_wd, k_bd, k_wf, k_bf = jax.random.split(key, 8)

    encoder_out = jax.random.normal(k_enc, (B, N, E), dtype=jnp.float32)
    decoder_hidden = jax.random.normal(k_dec, (B, H), dtype=jnp.float32)

    params = {
        "we": jax.random.normal(k_we, (A, E), dtype=jnp.float32) * 0.1,
        "be": jax.random.normal(k_be, (A,), dtype=jnp.float32) * 0.1,
        "wd": jax.random.normal(k_wd, (A, H), dtype=jnp.float32) * 0.1,
        "bd": jax.random.normal(k_bd, (A,), dtype=jnp.float32) * 0.1,
        "wf": jax.random.normal(k_wf, (1, A), dtype=jnp.float32) * 0.1,
        "bf": jax.random.normal(k_bf, (1,), dtype=jnp.float32) * 0.1,
    }

    awe_ref, att_ref = attention_reference(encoder_out, decoder_hidden, params)

    # Plain path (N unpadded, auto batch tile).
    awe, att = attention_forward(encoder_out, decoder_hidden, params)
    jax.block_until_ready((awe, att))
    assert awe.shape == (B, E) and att.shape == (B, N)
    # bf16 MXU matmuls (f32 accumulation) + approx reciprocal -> loosened tolerance.
    assert jnp.allclose(awe, awe_ref, atol=5e-2, rtol=5e-2), (
        f"awe max err {jnp.max(jnp.abs(awe - awe_ref))}")
    assert jnp.allclose(att, att_ref, atol=5e-2, rtol=5e-2), (
        f"att max err {jnp.max(jnp.abs(att - att_ref))}")

    # Lane-padded path: N padded to 128 and masked to -inf before the softmax.
    awe_p, att_p = attention_forward(encoder_out, decoder_hidden, params, pad_seq=True)
    jax.block_until_ready((awe_p, att_p))
    assert jnp.allclose(awe_p, awe_ref, atol=5e-2, rtol=5e-2), (
        f"awe(pad) max err {jnp.max(jnp.abs(awe_p - awe_ref))}")
    assert jnp.allclose(att_p, att_ref, atol=5e-2, rtol=5e-2), (
        f"att(pad) max err {jnp.max(jnp.abs(att_p - att_ref))}")

    print("KERNEL_OK")
</pallas_src>

<mosaic_0001>
module attributes {stable_mosaic.version = 11 : i64} {
  func.func @attention_kernel(%arg0: i32, %arg1: memref<8x24x64xf32, #tpu.memory_space<vmem>>, %arg2: memref<8x48xf32, #tpu.memory_space<vmem>>, %arg3: memref<64x32xbf16, #tpu.memory_space<vmem>>, %arg4: memref<48x32xbf16, #tpu.memory_space<vmem>>, %arg5: memref<1x32xf32, #tpu.memory_space<vmem>>, %arg6: memref<1x32xf32, #tpu.memory_space<vmem>>, %arg7: memref<1x1xf32, #tpu.memory_space<smem>>, %arg8: memref<8x64xf32, #tpu.memory_space<vmem>>, %arg9: memref<8x24xf32, #tpu.memory_space<vmem>>) attributes {dimension_semantics = [#tpu.dimension_semantics<parallel>], iteration_bounds = array<i64: 2>, scalar_prefetch = 0 : i64, scratch_operands = 0 : i64, tpu.core_type = #tpu.core_type<tc>, window_params = [{transform_indices = @transform_0, window_bounds = array<i64: 8, 24, 64>}, {transform_indices = @transform_1, window_bounds = array<i64: 8, 48>}, {pipeline_mode = #tpu.pipeline_mode<synchronous>, transform_indices = @transform_2, window_bounds = array<i64: 64, 32>}, {pipeline_mode = #tpu.pipeline_mode<synchronous>, transform_indices = @transform_3, window_bounds = array<i64: 48, 32>}, {pipeline_mode = #tpu.pipeline_mode<synchronous>, transform_indices = @transform_4, window_bounds = array<i64: 1, 32>}, {pipeline_mode = #tpu.pipeline_mode<synchronous>, transform_indices = @transform_5, window_bounds = array<i64: 1, 32>}, {transform_indices = @transform_6, window_bounds = array<i64: 1, 1>}, {transform_indices = @transform_7, window_bounds = array<i64: 8, 64>}, {transform_indices = @transform_8, window_bounds = array<i64: 8, 24>}]} {
    %c0 = arith.constant 0 : index
    %c0_0 = arith.constant 0 : index
    %c0_1 = arith.constant 0 : index
    %0 = vector.load %arg1[%c0, %c0_0, %c0_1] : memref<8x24x64xf32, #tpu.memory_space<vmem>>, vector<8x24x64xf32>
    %c0_2 = arith.constant 0 : index
    %c0_3 = arith.constant 0 : index
    %1 = vector.load %arg2[%c0_2, %c0_3] : memref<8x48xf32, #tpu.memory_space<vmem>>, vector<8x48xf32>
    %2 = arith.truncf %0 : vector<8x24x64xf32> to vector<8x24x64xbf16>
    %3 = vector.shape_cast %2 : vector<8x24x64xbf16> to vector<192x64xbf16>
    %c0_4 = arith.constant 0 : index
    %c0_5 = arith.constant 0 : index
    %4 = vector.load %arg3[%c0_4, %c0_5] : memref<64x32xbf16, #tpu.memory_space<vmem>>, vector<64x32xbf16>
    %cst = arith.constant dense<0.000000e+00> : vector<192x32xf32>
    %5 = tpu.matmul %3, %4, %cst {dimension_numbers = #tpu.dot_dimension_numbers<[1], [0], [0], [1], [0, 0, 1, 1], [], []>} : vector<192x64xbf16>, vector<64x32xbf16>, vector<192x32xf32> -> vector<192x32xf32>
    %6 = arith.truncf %1 : vector<8x48xf32> to vector<8x48xbf16>
    %c0_6 = arith.constant 0 : index
    %c0_7 = arith.constant 0 : index
    %7 = vector.load %arg4[%c0_6, %c0_7] : memref<48x32xbf16, #tpu.memory_space<vmem>>, vector<48x32xbf16>
    %cst_8 = arith.constant dense<0.000000e+00> : vector<8x32xf32>
    %8 = tpu.matmul %6, %7, %cst_8 {dimension_numbers = #tpu.dot_dimension_numbers<[1], [0], [0], [1], [0, 0, 1, 1], [], []>} : vector<8x48xbf16>, vector<48x32xbf16>, vector<8x32xf32> -> vector<8x32xf32>
    %9 = vector.shape_cast %5 : vector<192x32xf32> to vector<8x24x32xf32>
    %10 = vector.shape_cast %8 : vector<8x32xf32> to vector<8x1x32xf32>
    %11 = vector.broadcast %10 : vector<8x1x32xf32> to vector<8x24x32xf32>
    %12 = arith.addf %9, %11 : vector<8x24x32xf32>
    %c0_9 = arith.constant 0 : index
    %c0_10 = arith.constant 0 : index
    %13 = vector.load %arg5[%c0_9, %c0_10] : memref<1x32xf32, #tpu.memory_space<vmem>>, vector<1x32xf32>
    %14 = vector.shape_cast %13 : vector<1x32xf32> to vector<1x1x32xf32>
    %15 = vector.broadcast %14 : vector<1x1x32xf32> to vector<8x24x32xf32>
    %16 = arith.addf %12, %15 : vector<8x24x32xf32>
    %cst_11 = arith.constant 0.000000e+00 : f32
    %17 = vector.broadcast %cst_11 : f32 to vector<8x24x32xf32>
    %18 = arith.maximumf %16, %17 : vector<8x24x32xf32>
    %c0_12 = arith.constant 0 : index
    %c0_13 = arith.constant 0 : index
    %19 = vector.load %arg6[%c0_12, %c0_13] : memref<1x32xf32, #tpu.memory_space<vmem>>, vector<1x32xf32>
    %20 = vector.shape_cast %19 : vector<1x32xf32> to vector<1x1x32xf32>
    %21 = vector.broadcast %20 : vector<1x1x32xf32> to vector<8x24x32xf32>
    %22 = arith.mulf %18, %21 : vector<8x24x32xf32>
    %cst_14 = arith.constant dense<0.000000e+00> : vector<8x24xf32>
    %23 = vector.multi_reduction <add>, %22, %cst_14 [2] : vector<8x24x32xf32> to vector<8x24xf32>
    %c0_15 = arith.constant 0 : index
    %c0_16 = arith.constant 0 : index
    %24 = memref.load %arg7[%c0_15, %c0_16] : memref<1x1xf32, #tpu.memory_space<smem>>
    %25 = vector.broadcast %24 : f32 to vector<8x24xf32>
    %26 = arith.addf %23, %25 : vector<8x24xf32>
    %cst_17 = arith.constant dense<0xFF800000> : vector<8xf32>
    %27 = vector.multi_reduction <maximumf>, %26, %cst_17 [1] : vector<8x24xf32> to vector<8xf32>
    %28 = vector.shape_cast %27 : vector<8xf32> to vector<8x1xf32>
    %29 = vector.broadcast %28 : vector<8x1xf32> to vector<8x24xf32>
    %30 = arith.subf %26, %29 : vector<8x24xf32>
    %31 = math.exp %30 : vector<8x24xf32>
    %cst_18 = arith.constant dense<0.000000e+00> : vector<8xf32>
    %32 = vector.multi_reduction <add>, %31, %cst_18 [1] : vector<8x24xf32> to vector<8xf32>
    %33 = vector.shape_cast %32 : vector<8xf32> to vector<8x1xf32>
    %34 = tpu.reciprocal %33 {approx = true} : vector<8x1xf32> -> vector<8x1xf32>
    %35 = vector.broadcast %34 : vector<8x1xf32> to vector<8x24xf32>
    %36 = arith.mulf %31, %35 : vector<8x24xf32>
    %37 = vector.shape_cast %36 : vector<8x24xf32> to vector<8x24x1xf32>
    %38 = vector.broadcast %37 : vector<8x24x1xf32> to vector<8x24x64xf32>
    %39 = arith.mulf %0, %38 : vector<8x24x64xf32>
    %cst_19 = arith.constant dense<0.000000e+00> : vector<8x64xf32>
    %40 = vector.multi_reduction <add>, %39, %cst_19 [1] : vector<8x24x64xf32> to vector<8x64xf32>
    %c0_20 = arith.constant 0 : index
    %c0_21 = arith.constant 0 : index
    %41 = vector.load %arg8[%c0_20, %c0_21] : memref<8x64xf32, #tpu.memory_space<vmem>>, vector<8x64xf32>
    tpu.vector_store %arg8[%c0_20, %c0_21], %40 {strides = array<i32>} : memref<8x64xf32, #tpu.memory_space<vmem>>, vector<8x64xf32>,
    %c0_22 = arith.constant 0 : index
    %c0_23 = arith.constant 0 : index
    %42 = vector.load %arg9[%c0_22, %c0_23] : memref<8x24xf32, #tpu.memory_space<vmem>>, vector<8x24xf32>
    tpu.vector_store %arg9[%c0_22, %c0_23], %26 {strides = array<i32>} : memref<8x24xf32, #tpu.memory_space<vmem>>, vector<8x24xf32>,
    return
  }
  func.func @transform_0(%arg0: i32) -> (i32, i32, i32) {
    %c0_i32 = arith.constant 0 : i32
    %c0_i32_0 = arith.constant 0 : i32
    %c0_i32_1 = arith.constant 0 : i32
    return %arg0, %c0_i32, %c0_i32_0 : i32, i32, i32
  }
  func.func @transform_1(%arg0: i32) -> (i32, i32) {
    %c0_i32 = arith.constant 0 : i32
    %c0_i32_0 = arith.constant 0 : i32
    return %arg0, %c0_i32 : i32, i32
  }
  func.func @transform_2(%arg0: i32) -> (i32, i32) {
    %c0_i32 = arith.constant 0 : i32
    %c0_i32_0 = arith.constant 0 : i32
    %c0_i32_1 = arith.constant 0 : i32
    return %c0_i32, %c0_i32_0 : i32, i32
  }
  func.func @transform_3(%arg0: i32) -> (i32, i32) {
    %c0_i32 = arith.constant 0 : i32
    %c0_i32_0 = arith.constant 0 : i32
    %c0_i32_1 = arith.constant 0 : i32
    return %c0_i32, %c0_i32_0 : i32, i32
  }
  func.func @transform_4(%arg0: i32) -> (i32, i32) {
    %c0_i32 = arith.constant 0 : i32
    %c0_i32_0 = arith.constant 0 : i32
    %c0_i32_1 = arith.constant 0 : i32
    return %c0_i32, %c0_i32_0 : i32, i32
  }
  func.func @transform_5(%arg0: i32) -> (i32, i32) {
    %c0_i32 = arith.constant 0 : i32
    %c0_i32_0 = arith.constant 0 : i32
    %c0_i32_1 = arith.constant 0 : i32
    return %c0_i32, %c0_i32_0 : i32, i32
  }
  func.func @transform_6(%arg0: i32) -> (i32, i32) {
    %c0_i32 = arith.constant 0 : i32
    %c0_i32_0 = arith.constant 0 : i32
    %c0_i32_1 = arith.constant 0 : i32
    return %c0_i32, %c0_i32_0 : i32, i32
  }
  func.func @transform_7(%arg0: i32) -> (i32, i32) {
    %c0_i32 = arith.constant 0 : i32
    %c0_i32_0 = arith.constant 0 : i32
    return %arg0, %c0_i32 : i32, i32
  }
  func.func @transform_8(%arg0: i32) -> (i32, i32) {
    %c0_i32 = arith.constant 0 : i32
    %c0_i32_0 = arith.constant 0 : i32
    return %arg0, %c0_i32 : i32, i32
  }
}

</mosaic_0001>

<bundles_post_ra>
// kernel: tpu_custom_call.1
= control target key start
LH: loop header
LB: loop body
LE: loop exit
PB: predicated region body
PF: predicated region fallthrough
CT: control target
= control target key end

     0   :  { %s3233_s0 = inlined_call_operand.hbm [shape: f32[16,24,64], index: 0, kind: input, shape index: {}]   ;;  %s3234_s1 = inlined_call_operand.vmem [shape: f32[16,48], index: 1, kind: input, shape index: {}]   ;;  %s3235_s2 = inlined_call_operand.vmem [shape: bf16[64,32], index: 2, kind: input, shape index: {}]   ;;  %s3236_s3 = inlined_call_operand.vmem [shape: bf16[48,32], index: 3, kind: input, shape index: {}]   ;;  %s3237_s4 = inlined_call_operand.vmem [shape: f32[1,32], index: 4, kind: input, shape index: {}]   ;;  %s3238_s5 = inlined_call_operand.vmem [shape: f32[1,32], index: 5, kind: input, shape index: {}]   ;;  %s3239_s6 = inlined_call_operand.<no memory space> [shape: f32[1,1], index: 6, kind: input, shape index: {}]   ;;  %s3240_s7 = inlined_call_operand.hbm [shape: f32[16,64], index: 7, kind: output, shape index: {0}]   ;;  %s3241_s8 = inlined_call_operand.hbm [shape: f32[16,24], index: 8, kind: output, shape index: {1}]  }
   0x1   :  { %3249 = sst [smem:[#allocation12_spill]] %s3233_s0 }
   0x2   :  { %14 = sst [smem:[#allocation2]] %s3239_s6 }
   0x3   :  { %15 = vsyncpa [#allocation4], 0 }
   0x4   :  { %17 = vsyncpa [#allocation4 + $0x1], 0 }
   0x5   :  { %18 = vsyncpa [#allocation5], 0 }
   0x6   :  { %20 = vsyncpa [#allocation5 + $0x1], 0 }
   0x7   :  { %21 = vsyncpa [#allocation8], 0 }
   0x8   :  { %23 = vsyncpa [#allocation8 + $0x1], 0  ;;  %s2410_s29 = smov 0   ;;  %s2412_s30 = smov 0  }
   0x9   :  { %s2414_s9 = smov 0   ;;  %s2416_s10 = smov 0  }
   0xa LB: > { %s2431_s6 = sadd.s32 4294967295, %s2351_s10   ;;  %s1970_s11 = sadd.s32 4294967294, %s2351_s10   ;;  %s2351_s10 = sphi %s2416_s10, %s3267_s10   ;;  %s2347_s9 = sphi %s2414_s9, %s3266_s9   ;;  %s2343_s30 = sphi %s2412_s30, %s3265_s30   ;;  %s2339_s29 = sphi %s2410_s29, %s3264_s29  }
   0xb   : > { %s2435_s12 = sadd.s32 1, %s2351_s10   ;;  %s36_s13 = sadd.s32 1, %s2347_s9 }
   0xc   : > { %s33_s14 = ssub.s32 %s2351_s10, %s2435_s12  ;;  %p43_p0 = scmp.ne.s32.totalorder %s2347_s9, %s2343_s30 }
   0xd   : > { %p34_p1 = scmp.eq.s32.totalorder %s33_s14, 0  ;;  %p44_p2 = scmp.eq.s32.totalorder %s2351_s10, 0 }
   0xe   : > { %p49_p3 = scmp.ne.s32.totalorder %s2343_s30, %s2339_s29  ;;  %p50_p4 = scmp.eq.s32.totalorder %s2431_s6, 0 }
   0xf   : > { %s2447_s15 = scalar_select %p34_p1, %s2347_s9, %s36_s13  }
  0x10   : > { %p45_p5 = por %p44_p2, %p43_p0  ;;  %p2449_p6 = por %p50_p4, %p49_p3 }
  0x11   : > { %p204_p7 = scmp.eq.s32.totalorder %s2431_s6, 1  ;;  %p210_p8 = scmp.eq.s32.totalorder %s1970_s11, 1 }
  0x12   : > { %s3250_s16 = scalar_select %p2449_p6, 1, 0 }
  0x13   : > { %p2106_p10 = scmp.lt.s32.totalorder %s2351_s10, 2  ;;  %p2456_p11 = por %p204_p7, %p43_p0 }
  0x14   : > { %p2460_p12 = por %p210_p8, %p49_p3  ;;  %s271_s19 = sand.u32 1, %s2347_s9  }
  0x15   : > { %s3251_s17 = scalar_select %p2456_p11, 1, 0 }
  0x16   : > { %s3252_s18 = scalar_select %p2460_p12, 1, 0 }
  0x17   : > { %s2087_s20 = smul.u32 3072, %s2351_s10  ;;  %s3253_s0 = sld [smem:[#allocation12_spill]] }
  0x18   : > { %s2086_s21 = smul.u32 192, %s271_s19  ;;  %p2471_p13 = pnand %p2106_p10, %p45_p5 }
  0x19   : > { %s2477_s28 = scalar_lea.sflag [#allocation4], %s271_s19 }
  0x1a   : > { %s275_s26 = scalar_lea.vmem [#allocation3], %s2086_s21  ;;  %p2231_p1 = pneg %p2471_p13 }
  0x1b   : > { %s283_s27 = sshll.u32 %s275_s26, 4  ;;  %s2475_s27 = int_to_ptr.vmem [resolvable:$true] %s283_s27 }
  0x1d   : > { %s2469_s24 = scalar_lea.hbm %s3253_s0, %s2087_s20  ;;  %s2234_s20 = scalar_lea.hbm %s3253_s0, 6144 }
  0x1e   : > { %s2229_s11 = scalar_lea.hbm %s2469_s24, 3072  ;;  %p2235_p4 = scmp.lt.s32.totalorder %s2469_s24, %s3253_s0 }
  0x1f   : > { %p2230_p0 = scmp.ne.s32.totalorder %s2469_s24, %s2229_s11  ;;  %p2236_p5 = scmp.lt.s32.totalorder %s2234_s20, %s2229_s11 }
  0x21   : > { %p2232_p2 = pnand %p2231_p1, %p2230_p0  ;;  %p2237_p7 = por %p2236_p5, %p2235_p4 }
  0x23   : > { %p2233_p3 = pneg %p2232_p2 }
  0x25   : > { %p2238_p8 = pnand %p2237_p7, %p2233_p3 }
  0x27   : > { %2241 = shalt.err (!%p2238_p8)
}
  0x28   : > { %s2242_s19 = scalar_lea.vmem %s2475_s27, 3072  ;;  %s2353_s21 = smov [#allocation3]  }
  0x29   : > { %p2243_p10 = scmp.ne.s32.totalorder %s2475_s27, %s2242_s19  ;;  %s2247_s26 = sshll.u32 %s2353_s21, 4  ;;  %s2248_s26 = int_to_ptr.vmem [resolvable:$false] %s2247_s26 }
  0x2a   : > { %s2249_s13 = scalar_lea.vmem %s2248_s26, 6144  ;;  %p2250_p2 = scmp.lt.s32.totalorder %s2475_s27, %s2248_s26 }
  0x2b   : > { %p2245_p9 = pnand %p2243_p10, %p2231_p1  ;;  %p2251_p12 = scmp.lt.s32.totalorder %s2249_s13, %s2242_s19 }
  0x2d   : > { %p2246_p0 = pneg %p2245_p9  ;;  %p2252_p11 = por %p2251_p12, %p2250_p2 }
  0x2f   : > { %p2253_p6 = pnand %p2252_p11, %p2246_p0 }
  0x31   : > { %2256 = shalt.err (!%p2253_p6)
}
  0x32   : > { %s2354_s11 = smov 128   ;;  %s2355_s14 = smov 8  }
  0x33   : > { %2098 = dma.hbm_to_vmem [thread:$0]  (!%p2471_p13), %s2469_s24, 3072, %s2475_s27, %s2477_s28, %s2354_s11, %s2354_s11, %s2355_s14  }
  0x34   : > { %p1976_p9 = scmp.ge.s32.totalorder %s2351_s10, 1  ;;  %p298_p1 = scmp.lt.s32.totalorder %s2351_s10, 3 }
  0x36   : > { %p299_p3 = pnand %p1976_p9, %p298_p1 }
  0x37   : > { %s2501_s20 = sand.u32 (!%p299_p3), 1, %s2343_s30   ;;  %p3255_p6 = scmp.ne.s32.totalorder (!%p299_p3), %s3250_s16, 0 }
  0x38   : > { %302 = sbr.rel (%p299_p3) target bundleno = 1220 (0x4c4), region = 48  ;;  %s305_s23 = scalar_lea.sflag (!%p299_p3), [#allocation4], %s2501_s20 }
  0x39   : > { %s2088_s22 = smul.u32 (!%p299_p3), 192, %s2501_s20 }
  0x3b   : > { %s2505_s19 = scalar_lea.vmem (!%p299_p3), [#allocation3], %s2088_s22 }
  0x3d   : > { %2326 = dma.done.wait (%p3255_p6), %s305_s23, 3072  }
  0x3e   : > { %2328 = vsyncadd (%p3255_p6), %s305_s23, 4294964224  ;;  %v2148_v0 = vld [vmem:[%s3235_s2 + $0x18] sm:$0xff]   ;;  %v2149_v1 = vld [vmem:[%s3235_s2 + $0x10] sm:$0xff]   ;;  %vm481_vm0 = vcmask 523264   ;;  %p351_p11 = scmp.lt.s32.totalorder %s2431_s6, 1  ;;  %v2356_v35 = vmov 0.0  }
  0x3f   : > { %2036 = vmatprep.subr.bf16.mxu0 %v2148_v0  ;;  %2078 = vmatprep.subr.bf16.mxu1 %v2148_v0  ;;  %v2150_v2 = vld [vmem:[%s3235_s2 + $0x8] sm:$0xff]   ;;  %v356_v3 = vld [vmem:[%s2505_s19] sm:$0xff]  ;;  %v2523_v5 = vld [vmem:[%s2505_s19 + $0x78] sm:$0xff]  ;;  %vm2357_vm1 = vmmov 0   ;;  %vm672_vm2 = vcmask 392192   ;;  %vm916_vm3 = vcmask 261120  }
  0x40   : > { %2037 = vmatpush3.bf16.msra.mxu0 %v2148_v0  ;;  %2082 = vmatpush3.bf16.msra.mxu1 %v2148_v0  ;;  %v357_v4 = vld [vmem:[%s2505_s19 + $0x8] sm:$0xff]  ;;  %v372_v7 = vld [vmem:[%s2505_s19 + $0x80] sm:$0xff]  ;;  %v359_v14 = vld [vmem:[%s2505_s19 + $0x18] sm:$0xff]  ;;  %s352_s22 = scalar_select %p351_p11, %s2431_s6, 1  ;;  %vm1050_vm4 = vcmask 130112   ;;  %vm1057_vm5 = vcmask 195712  }
  0x41   : > { %2038 = vmatprep.subr.bf16.mxu0 %v2149_v1  ;;  %2079 = vmatprep.subr.bf16.mxu1 %v2149_v1  ;;  %v381_v6 = vpack.c.bf16 %v357_v4, %v356_v3  ;;  %v373_v8 = vld [vmem:[%s2505_s19 + $0x88] sm:$0xff]  ;;  %v391_v9 = vpack.c.bf16 %v372_v7, %v2523_v5  ;;  %v2151_v11 = vld [vmem:[%s3235_s2] sm:$0xff]   ;;  %v358_v17 = vld [vmem:[%s2505_s19 + $0x10] sm:$0xff]  ;;  %v2358_v4 = vmov 1966171168   ;;  %v721_v7 = vlaneseq  ;;  %s989_s23 = sld [smem:[#allocation2]] }
  0x42   : > { %v392_v10 = vpack.c.bf16 %v373_v8, %v373_v8  ;;  %v360_v15 = vld [vmem:[%s2505_s19 + $0x20] sm:$0xff]  ;;  %v361_v16 = vld [vmem:[%s2505_s19 + $0x28] sm:$0xff]  ;;  %v374_v21 = vld [vmem:[%s2505_s19 + $0x90] sm:$0xff]  ;;  %v2012_v29 = vpack.c.bf16 %v359_v14, %v358_v17  ;;  %s1979_s25 = sshll.u32 %s352_s22, 3  ;;  %vm1157_vm6 = vcmask 1041409   ;;  %vm1159_vm7 = vcmask 1042434  }
  0x43   : > { %v429_v12 = vunpack.c.h.b16 %v391_v9  ;;  %2044 = vmatprep.mubr.msk.bf16.mxu0 %vm481_vm0, %v381_v6  ;;  %v383_v18 = vpack.c.bf16 %v360_v15, %v359_v14  ;;  %v384_v19 = vpack.c.bf16 %v361_v16, %v361_v16  ;;  %v375_v22 = vld [vmem:[%s2505_s19 + $0x98] sm:$0xff]  ;;  %v377_v23 = vld [vmem:[%s2505_s19 + $0xa8] sm:$0xff]  ;;  %v378_v26 = vld [vmem:[%s2505_s19 + $0xb0] sm:$0xff]  ;;  %s354_s26 = scalar_lea.vmem %s3234_s1, %s1979_s25  ;;  %v719_v6 = vunpack.c.l.s4 %v2358_v4  ;;  %s3247_s24 = sshll.u32 %s2501_s20, 3 }
  0x44   : > { %2039 = vmatpush3.bf16.msra.mxu0 %v2149_v1  ;;  %2083 = vmatpush3.bf16.msra.mxu1 %v2149_v1  ;;  %v430_v13 = vunpack.c.l.b16 %v392_v10  ;;  %v379_v27 = vld [vmem:[%s2505_s19 + $0xb8] sm:$0xff]  ;;  %v376_v28 = vld [vmem:[%s2505_s19 + $0xa0] sm:$0xff]  ;;  %v393_v30 = vpack.c.bf16 %v375_v22, %v374_v21  ;;  %v395_v31 = vpack.c.bf16 %v378_v26, %v377_v23  ;;  %v2152_v33 = vld [vmem:[%s3236_s3 + $0x10] sm:$0xff]   ;;  %vm1161_vm8 = vcmask 1043459   ;;  %s2876_s25 = scalar_lea.vmem [#allocation7], %s3247_s24  ;;  %s3248_s27 = sshll.u32 %s2431_s6, 7 }
  0x45   : > { %2040 = vmatprep.subr.bf16.mxu0 %v2150_v2  ;;  %2080 = vmatprep.subr.bf16.mxu1 %v2150_v2  ;;  %v417_v24 = vunpack.c.h.b16 %v383_v18  ;;  %v418_v25 = vunpack.c.l.b16 %v384_v19  ;;  %v396_v32 = vpack.c.bf16 %v379_v27, %v379_v27  ;;  %v2015_v36 = vpack.c.bf16 %v377_v23, %v376_v28  ;;  %v2153_v37 = vld [vmem:[%s3236_s3 + $0x8] sm:$0xff]   ;;  %v362_v38 = vld [vmem:[%s2505_s19 + $0x30] sm:$0xff]  ;;  %v363_v39 = vld [vmem:[%s2505_s19 + $0x38] sm:$0xff]  ;;  %s1854_s16 = scalar_lea.hbm %s3241_s8, %s3248_s27  ;;  %s1830_s13 = scalar_lea.sflag [#allocation8], %s2501_s20 }
  0x46   : > { %v453_v20 = vpack.c.b16 %v430_v13, %v429_v12  ;;  %v435_v40 = vunpack.c.h.b16 %v395_v31  ;;  %v365_v42 = vld [vmem:[%s2505_s19 + $0x48] sm:$0xff]  ;;  %v366_v43 = vld [vmem:[%s2505_s19 + $0x50] sm:$0xff]  ;;  %v367_v44 = vld [vmem:[%s2505_s19 + $0x58] sm:$0xff]  ;;  %v385_v46 = vpack.c.bf16 %v363_v39, %v362_v38  ;;  %v2590_v12 = vshrl.u32 %v721_v7, 7  ;;  %p3259_p13 = scmp.ne.s32.totalorder %s3251_s17, 0  ;;  %s2360_s14 = smov [#allocation7]  }
  0x47   : > { %v447_v34 = vpack.c.b16 %v418_v25, %v417_v24  ;;  %v436_v41 = vunpack.c.l.b16 %v396_v32  ;;  %v364_v45 = vld [vmem:[%s2505_s19 + $0x40] sm:$0xff]  ;;  %v387_v48 = vpack.c.bf16 %v366_v43, %v365_v42  ;;  %v388_v49 = vpack.c.bf16 %v367_v44, %v367_v44  ;;  %v369_v56 = vld [vmem:[%s2505_s19 + $0x68] sm:$0xff]  ;;  %v370_v60 = vld [vmem:[%s2505_s19 + $0x70] sm:$0xff]  ;;  %s2261_s22 = sshll.u32 %s2360_s14, 4  ;;  %s2262_s22 = int_to_ptr.vmem [resolvable:$false] %s2261_s22 }
  0x48   : > { %2041 = vmatpush3.bf16.msra.mxu0 %v2150_v2  ;;  %2084 = vmatpush3.bf16.msra.mxu1 %v2150_v2  ;;  %v2154_v50 = vld [vmem:[%s3236_s3] sm:$0xff]   ;;  %v2013_v51 = vpack.c.bf16 %v365_v42, %v364_v45  ;;  %v2014_v61 = vpack.c.bf16 %v2523_v5, %v370_v60  ;;  %v2602_v23 = vsub.s32 0, %v2590_v12  ;;  %vm1163_vm9 = vcmask 1044484  }
  0x49   : > { %2042 = vmatprep.subr.bf16.mxu0 %v2151_v11  ;;  %2081 = vmatprep.subr.bf16.mxu1 %v2151_v11  ;;  %v456_v47 = vpack.c.b16 %v436_v41, %v435_v40  ;;  %v423_v52 = vunpack.c.h.b16 %v387_v48  ;;  %v424_v53 = vunpack.c.l.b16 %v388_v49  ;;  %v380_v54 = vld [vmem:[%s354_s26] sm:$0xff]  ;;  %vm1165_vm10 = vcmask 1045509   ;;  %s1856_s26 = sshll.u32 %s2876_s25, 4  ;;  %s1857_s26 = int_to_ptr.vmem [resolvable:$true] %s1856_s26 }
  0x4a   : > { %2060 = vmatprep.mubr.msk.bf16.mxu1 %vm481_vm0, %v453_v20  ;;  %v368_v55 = vld [vmem:[%s2505_s19 + $0x60] sm:$0xff]  ;;  %v647_v58 = vpack.c.bf16 %v380_v54, %v380_v54  ;;  %vm1167_vm11 = vcmask 1046534   ;;  %vm1169_vm12 = vcmask 1047559   ;;  %vm1172_vm13 = vcmask 195584   ;;  %s2257_s11 = scalar_lea.vmem %s1857_s26, 128  ;;  %p2264_p7 = scmp.lt.s32.totalorder %s1857_s26, %s2262_s22 }
  0x4b   : > { %v450_v57 = vpack.c.b16 %v424_v53, %v423_v52  ;;  %v389_v59 = vpack.c.bf16 %v369_v56, %v368_v55  ;;  %v2615_v41 = vld [vmem:[%s3238_s5] ss:$0 sm:$0xff]  ;;  %p2258_p12 = scmp.ne.s32.totalorder %s1857_s26, %s2257_s11 }
  0x4c   : > { %2043 = vmatpush3.bf16.msra.mxu0 %v2151_v11  ;;  %2085 = vmatpush3.bf16.msra.mxu1 %v2151_v11  ;;  %v720_v11 = vunpack.c.0.s8 %v719_v6 }
  0x4d   : > { %2068 = vmatprep.subr.bf16.mxu1 %v2356_v35  ;;  %p2259_p4 = pnand %p2258_p12, %p3259_p13 }
  0x4e   : > { %v723_v17 = vsub.s32 %v720_v11, %v2590_v12 }
  0x4f   : > { %2045 = vmatmul.mubr.msk.bf16.vlgmr.msra.gmra.mxu0 %vm481_vm0, %v2012_v29  ;;  %2061 = vmatmul.mubr.msk.bf16.vlgmr.msra.gmra.mxu1 %vm481_vm0, %v393_v30  ;;  %p2260_p5 = pneg %p2259_p4 }
  0x50   : > { %2069 = vmatpush3.bf16.msra.mxu1 %v2152_v33  ;;  %2048 = vmatprep.mubr.msk.bf16.mxu0 %vm481_vm0, %v447_v34  ;;  %v2609_v34 = vld [vmem:[%s3237_s4] ss:$0 sm:$0xff] }
  0x51   : > { %2070 = vmatprep.subr.bf16.mxu1 %v2356_v35  ;;  %2064 = vmatprep.mubr.msk.bf16.mxu1 %vm481_vm0, %v2015_v36 }
  0x54   : > { %2071 = vmatpush3.bf16.msra.mxu1 %v2153_v37 }
  0x55   : > { %2072 = vmatprep.subr.bf16.mxu1 %v2356_v35 }
  0x57   : > { %2049 = vmatmul.mubr.msk.bf16.gmra.mxu0 %vm481_vm0, %v385_v46  ;;  %2065 = vmatmul.mubr.msk.bf16.gmra.mxu1 %vm481_vm0, %v456_v47 }
  0x58   : > { %2073 = vmatpush3.bf16.msra.mxu1 %v2154_v50  ;;  %2052 = vmatprep.mubr.msk.bf16.mxu0 %vm481_vm0, %v2013_v51 }
  0x59   : > { %2074 = vmatprep.mubr.msk.bf16.mxu1 %vm2357_vm1, %v2356_v35 }
  0x5f   : > { %2053 = vmatmul.mubr.msk.bf16.gmra.mxu0 %vm481_vm0, %v450_v57  ;;  %2075 = vmatmul.mubr.msk.bf16.vlgmr.msra.gmra.mxu1 %vm672_vm2, %v647_v58 }
  0x60   : > { %2056 = vmatprep.mubr.msk.bf16.mxu0 %vm481_vm0, %v389_v59 }
  0x67   : > { %2057 = vmatmul.mubr.msk.bf16.gmra.mxu0 %vm481_vm0, %v2014_v61 }
 0x10f   : > { %v2577_v62 = vpop.f32.mrf.mxu0  ;;  %v2579_v63 = vpop.f32.mrf.mxu1 }
 0x111   : > { %v552_v0 = vpop.f32.mrf.mxu0  ;;  %v2581_v1 = vpop.f32.mrf.mxu1 }
 0x113   : > { %v2047_v2 = vpop.f32.mrf.mxu0  ;;  %v2583_v3 = vpop.f32.mrf.mxu1 }
 0x115   : > { %v555_v8 = vpop.f32.mrf.mxu0  ;;  %v2585_v9 = vpop.f32.mrf.mxu1 }
 0x117   : > { %v2050_v10 = vpop.f32.mrf.mxu0  ;;  %v2587_v5 = vpop.f32.mrf.mxu1 }
 0x119   : > { %v568_v13 = vpop.f32.mrf.mxu0  ;;  %v2592_v14 = vpop.f32.mrf.mxu1 }
 0x11b   : > { %v2051_v15 = vpop.f32.mrf.mxu0  ;;  %v2594_v16 = vpop.f32.mrf.mxu1 }
 0x11d   : > { %v571_v18 = vpop.f32.mrf.mxu0  ;;  %v2597_v19 = vpop.f32.mrf.mxu1 }
 0x11f   : > { %v710_v20 = vpop.f32.mrf.mxu1  ;;  %v2599_v21 = vpop.f32.mrf.mxu0 }
 0x120   : > { %v724_v22 = vrot.slane %v710_v20, %v723_v17  ;;  %v717_v27 = vcombine.high %v710_v20, %v710_v20 }
 0x121   : > { %v2076_v24 = vpop.f32.mrf.mxu1  ;;  %v584_v30 = vpop.f32.mrf.mxu0 }
 0x122   : > { %v732_v25 = vcombine.high %v724_v22, %v724_v22  ;;  %v740_v26 = vrot.slane %v724_v22, %v723_v17  ;;  %v731_v35 = vrot.slane %v717_v27, %v723_v17 }
 0x123   : > { %v713_v28 = vpop.f32.mrf.mxu1  ;;  %v2055_v37 = vpop.f32.mrf.mxu0 }
 0x124   : > { %v754_v29 = vrot.slane %v732_v25, %v723_v17  ;;  %v769_v31 = vrot.slane %v740_v26, %v2602_v23  ;;  %v762_v39 = vcombine.high %v740_v26, %v740_v26  ;;  %v747_v42 = vrot.slane %v731_v35, %v723_v17 }
 0x125   : > { %v2077_v32 = vpop.f32.mrf.mxu1  ;;  %v587_v47 = vpop.f32.mrf.mxu0  ;;  %v733_v51 = vcombine.high %v731_v35, %v731_v35 }
 0x126   : > { %v773_v33 = vrot.slane %v754_v29, %v2602_v23  ;;  %v806_v36 = vadd.f32 %v769_v31, %v552_v0  ;;  %v807_v45 = vadd.f32 %v769_v31, %v555_v8  ;;  %v764_v46 = vcombine.high %v754_v29, %v754_v29 }
 0x127   : > { %v777_v48 = vrot.slane %v762_v39, %v2602_v23  ;;  %v2621_v52 = vrot.slane %v747_v42, %v2602_v23  ;;  %v2058_v57 = vpop.f32.mrf.mxu0  ;;  %v808_v59 = vadd.f32 %v2577_v62, %v769_v31  ;;  %v2629_v6 = vrot.slane %v733_v51, %v723_v17 }
 0x128   : > { %v809_v38 = vadd.f32 %v2047_v2, %v773_v33  ;;  %v837_v40 = vadd.f32 %v2609_v34, %v806_v36  ;;  %v838_v55 = vadd.f32 %v2609_v34, %v807_v45  ;;  %v781_v56 = vrot.slane %v764_v46, %v2602_v23 }
 0x129   : > { %v810_v58 = vadd.f32 %v773_v33, %v568_v13  ;;  %v811_v60 = vadd.f32 %v773_v33, %v571_v18  ;;  %v814_v61 = vadd.f32 %v777_v48, %v584_v30  ;;  %v812_v4 = vadd.f32 %v2050_v10, %v777_v48 }
 0x12a   : > { %v861_v43 = vmax.f32 %v837_v40, 0.0  ;;  %v840_v44 = vadd.f32 %v2609_v34, %v809_v38  ;;  %v862_v2 = vmax.f32 %v838_v55, 0.0  ;;  %v839_v11 = vadd.f32 %v2609_v34, %v808_v59  ;;  %v600_v38 = vpop.f32.mrf.mxu0 }
 0x12b   : > { %v841_v8 = vadd.f32 %v2609_v34, %v810_v58  ;;  %v842_v20 = vadd.f32 %v2609_v34, %v811_v60  ;;  %v820_v22 = vadd.f32 %v2058_v57, %v2621_v52  ;;  %v843_v62 = vadd.f32 %v2609_v34, %v812_v4 }
 0x12c   : > { %v892_v49 = vmul.f32 %v2615_v41, %v861_v43  ;;  %v864_v50 = vmax.f32 %v840_v44, 0.0  ;;  %v893_v13 = vmul.f32 %v2615_v41, %v862_v2  ;;  %v813_v18 = vadd.f32 %v2051_v15, %v777_v48  ;;  %v2059_v60 = vpop.f32.mrf.mxu0 }
 0x12d   : > { %v815_v24 = vadd.f32 %v781_v56, %v587_v47  ;;  %v865_v25 = vmax.f32 %v841_v8, 0.0  ;;  %v863_v26 = vmax.f32 %v839_v11, 0.0  ;;  %v866_v10 = vmax.f32 %v842_v20, 0.0 }
 0x12e   : > { %v917_v53 = vsel %vm916_vm3, %v892_v49, 0.0  ;;  %v895_v54 = vmul.f32 %v2615_v41, %v864_v50  ;;  %v845_v17 = vadd.f32 %v2609_v34, %v814_v61  ;;  %v920_v27 = vsel %vm916_vm3, %v893_v13, 0.0 }
 0x12f   : > { %918 = vadd.xlane.f32.xlu0 %v917_v53  ;;  %v867_v28 = vmax.f32 %v843_v62, 0.0  ;;  %v844_v29 = vadd.f32 %v2609_v34, %v813_v18  ;;  %v896_v30 = vmul.f32 %v2615_v41, %v865_v25  ;;  %v894_v31 = vmul.f32 %v2615_v41, %v863_v26 }
 0x130   : > { %v926_v0 = vsel %vm916_vm3, %v895_v54, 0.0  ;;  %v763_v32 = vcombine.high %v747_v42, %v747_v42  ;;  %v817_v33 = vadd.f32 %v2055_v37, %v781_v56  ;;  %v851_v15 = vadd.f32 %v2609_v34, %v820_v22 }
 0x131   : > { %927 = vadd.xlane.f32.xlu1 %v926_v0  ;;  %v789_v35 = vrot.slane %v2629_v6, %v2602_v23  ;;  %v846_v36 = vadd.f32 %v2609_v34, %v815_v24  ;;  %v929_v39 = vsel %vm916_vm3, %v896_v30, 0.0  ;;  %v897_v40 = vmul.f32 %v2615_v41, %v866_v10 }
 0x132   : > { %v868_v43 = vmax.f32 %v844_v29, 0.0  ;;  %v869_v44 = vmax.f32 %v845_v17, 0.0  ;;  %v923_v45 = vsel %vm916_vm3, %v894_v31, 0.0  ;;  %v898_v42 = vmul.f32 %v2615_v41, %v867_v28  ;;  %v603_v28 = vpop.f32.mrf.mxu0 }
 0x133   : > { %921 = vadd.xlane.f32.xlu0 %v920_v27  ;;  %v816_v37 = vadd.f32 %v2599_v21, %v781_v56  ;;  %v793_v46 = vrot.slane %v763_v32, %v2602_v23  ;;  %v848_v47 = vadd.f32 %v2609_v34, %v817_v33  ;;  %v818_v48 = vadd.f32 %v2621_v52, %v600_v38 }
 0x134   : > { %v870_v49 = vmax.f32 %v846_v36, 0.0  ;;  %v932_v50 = vsel %vm916_vm3, %v897_v40, 0.0  ;;  %v899_v51 = vmul.f32 %v2615_v41, %v868_v43  ;;  %v823_v53 = vadd.f32 %v789_v35, %v2585_v9 }
 0x135   : > { %930 = vadd.xlane.f32.xlu1 %v929_v39  ;;  %v875_v54 = vmax.f32 %v851_v15, 0.0  ;;  %v935_v55 = vsel %vm916_vm3, %v898_v42, 0.0  ;;  %v900_v21 = vmul.f32 %v2615_v41, %v869_v44  ;;  %v847_v56 = vadd.f32 %v2609_v34, %v816_v37 }
 0x136   : > { %v872_v57 = vmax.f32 %v848_v47, 0.0  ;;  %v849_v58 = vadd.f32 %v2609_v34, %v818_v48  ;;  %v765_v59 = vcombine.high %v2629_v6, %v2629_v6  ;;  %v938_v61 = vsel %vm916_vm3, %v899_v51, 0.0 }
 0x137   : > { %924 = vadd.xlane.f32.xlu0 %v923_v45  ;;  %v901_v9 = vmul.f32 %v2615_v41, %v870_v49  ;;  %v854_v0 = vadd.f32 %v2609_v34, %v823_v53  ;;  %v825_v2 = vadd.f32 %v2583_v3, %v793_v46  ;;  %v941_v4 = vsel %vm916_vm3, %v900_v21, 0.0 }
 0x138   : > { %v906_v8 = vmul.f32 %v2615_v41, %v875_v54  ;;  %v871_v11 = vmax.f32 %v847_v56, 0.0  ;;  %v822_v20 = vadd.f32 %v789_v35, %v2581_v1  ;;  %v797_v6 = vrot.slane %v765_v59, %v2602_v23 }
 0x139   : > { %933 = vadd.xlane.f32.xlu1 %v932_v50  ;;  %v821_v22 = vadd.f32 %v2059_v60, %v789_v35  ;;  %v903_v13 = vmul.f32 %v2615_v41, %v872_v57  ;;  %v873_v62 = vmax.f32 %v849_v58, 0.0  ;;  %v944_v18 = vsel %vm916_vm3, %v901_v9, 0.0 }
 0x13a   : > { %v878_v24 = vmax.f32 %v854_v0, 0.0  ;;  %v856_v3 = vadd.f32 %v2609_v34, %v825_v2  ;;  %v959_v25 = vsel %vm916_vm3, %v906_v8, 0.0  ;;  %v902_v26 = vmul.f32 %v2615_v41, %v871_v11 }
 0x13b   : > { %936 = vadd.xlane.f32.xlu0 %v935_v55  ;;  %v853_v10 = vadd.f32 %v2609_v34, %v822_v20  ;;  %v824_v1 = vadd.f32 %v2579_v63, %v793_v46  ;;  %v852_v17 = vadd.f32 %v2609_v34, %v821_v22  ;;  %v950_v27 = vsel %vm916_vm3, %v903_v13, 0.0 }
 0x13c   : > { %v909_v29 = vmul.f32 %v2615_v41, %v878_v24  ;;  %v904_v30 = vmul.f32 %v2615_v41, %v873_v62  ;;  %v880_v31 = vmax.f32 %v856_v3, 0.0  ;;  %v827_v32 = vadd.f32 %v797_v6, %v2597_v19 }
 0x13d   : > { %939 = vadd.xlane.f32.xlu1 %v938_v61  ;;  %v947_v33 = vsel %vm916_vm3, %v902_v26, 0.0  ;;  %v877_v15 = vmax.f32 %v853_v10, 0.0  ;;  %v855_v35 = vadd.f32 %v2609_v34, %v824_v1  ;;  %v826_v63 = vadd.f32 %v793_v46, %v2592_v14 }
 0x13e   : > { %v876_v36 = vmax.f32 %v852_v17, 0.0  ;;  %v819_v38 = vadd.f32 %v2621_v52, %v603_v28  ;;  %v968_v39 = vsel %vm916_vm3, %v909_v29, 0.0  ;;  %v953_v40 = vsel %vm916_vm3, %v904_v30, 0.0 }
 0x13f   : > { %942 = vadd.xlane.f32.xlu0 %v941_v4  ;;  %v911_v43 = vmul.f32 %v2615_v41, %v880_v31  ;;  %v858_v19 = vadd.f32 %v2609_v34, %v827_v32  ;;  %v908_v44 = vmul.f32 %v2615_v41, %v877_v15  ;;  %v879_v45 = vmax.f32 %v855_v35, 0.0 }
 0x140   : > { %v857_v42 = vadd.f32 %v2609_v34, %v826_v63  ;;  %v828_v14 = vadd.f32 %v2587_v5, %v797_v6  ;;  %v850_v37 = vadd.f32 %v2609_v34, %v819_v38  ;;  %v907_v46 = vmul.f32 %v2615_v41, %v876_v36 }
 0x141   : > { %945 = vadd.xlane.f32.xlu1 %v944_v18  ;;  %v974_v52 = vsel %vm916_vm3, %v911_v43, 0.0  ;;  %v882_v47 = vmax.f32 %v858_v19, 0.0  ;;  %v829_v48 = vadd.f32 %v2594_v16, %v797_v6  ;;  %v965_v49 = vsel %vm916_vm3, %v908_v44, 0.0 }
 0x142   : > { %v910_v50 = vmul.f32 %v2615_v41, %v879_v45  ;;  %v881_v51 = vmax.f32 %v857_v42, 0.0  ;;  %v859_v53 = vadd.f32 %v2609_v34, %v828_v14  ;;  %v874_v5 = vmax.f32 %v850_v37, 0.0 }
 0x143   : > { %960 = vadd.xlane.f32.xlu0 %v959_v25  ;;  %v962_v54 = vsel %vm916_vm3, %v907_v46, 0.0  ;;  %v913_v55 = vmul.f32 %v2615_v41, %v882_v47  ;;  %v860_v21 = vadd.f32 %v2609_v34, %v829_v48  ;;  %v1040_v10 = vand.u32 127, %v721_v7 }
 0x144   : > { %v971_v56 = vsel %vm916_vm3, %v910_v50, 0.0  ;;  %v912_v16 = vmul.f32 %v2615_v41, %v881_v51  ;;  %v883_v57 = vmax.f32 %v859_v53, 0.0  ;;  %v905_v59 = vmul.f32 %v2615_v41, %v874_v5 }
 0x145   : > { %951 = vadd.xlane.f32.xlu1 %v950_v27  ;;  %v980_v58 = vsel %vm916_vm3, %v913_v55, 0.0  ;;  %v884_v60 = vmax.f32 %v860_v21, 0.0  ;;  %v1045_v17 = vadd.s32 4294967288, %v1040_v10  ;;  %v1052_v28 = vadd.s32 4294967280, %v1040_v10 }
 0x146   : > { %v977_v61 = vsel %vm916_vm3, %v912_v16, 0.0  ;;  %v914_v9 = vmul.f32 %v2615_v41, %v883_v57  ;;  %v956_v34 = vsel %vm916_vm3, %v905_v59, 0.0  ;;  %v2717_v29 = vstv %s989_s23  ;;  %s2263_s23 = scalar_lea.vmem %s2262_s22, 256 }
 0x147   : > { %948 = vadd.xlane.f32.xlu0 %v947_v33  ;;  %v915_v0 = vmul.f32 %v2615_v41, %v884_v60  ;;  %v2729_v15 = vsub.s32 %v1045_v17, %v2590_v12  ;;  %v2738_v36 = vsub.s32 %v1052_v28, %v2590_v12  ;;  %p2265_p8 = scmp.lt.s32.totalorder %s2263_s23, %s2257_s11 }
 0x148   : > { %v983_v2 = vsel %vm916_vm3, %v914_v9, 0.0 }
 0x149   : > { %969 = vadd.xlane.f32.xlu1 %v968_v39  ;;  %v986_v4 = vsel %vm916_vm3, %v915_v0, 0.0  ;;  %p2266_p10 = por %p2265_p8, %p2264_p7 }
 0x14b   : > { %954 = vadd.xlane.f32.xlu0 %v953_v40  ;;  %v2747_v40 = vsub.s32 %v1040_v10, %v2590_v12  ;;  %p2267_p0 = pnand %p2266_p10, %p2260_p5 }
 0x14d   : > { %975 = vadd.xlane.f32.xlu1 %v974_v52 }
 0x14f   : > { %966 = vadd.xlane.f32.xlu0 %v965_v49 }
 0x151   : > { %963 = vadd.xlane.f32.xlu1 %v962_v54 }
 0x153   : > { %972 = vadd.xlane.f32.xlu0 %v971_v56 }
 0x155   : > { %981 = vadd.xlane.f32.xlu1 %v980_v58 }
 0x157   : > { %978 = vadd.xlane.f32.xlu0 %v977_v61 }
 0x159   : > { %957 = vadd.xlane.f32.xlu1 %v956_v34 }
 0x15b   : > { %984 = vadd.xlane.f32.xlu0 %v983_v2 }
 0x15d   : > { %987 = vadd.xlane.f32.xlu1 %v986_v4 }
 0x1b8   : > { %v919_v8 = vpop.xlane.xlu0 %918 }
 0x1b9   : > { %v2750_v43 = vadd.f32 %v2717_v29, %v919_v8 }
 0x1ba   : > { %v928_v11 = vpop.xlane.xlu1 %927 }
 0x1bb   : > { %v2732_v7 = vadd.f32 %v2717_v29, %v928_v11  ;;  %v1044_v51 = vrot.slane %v2750_v43, %v2747_v40 }
 0x1bc   : > { %v922_v20 = vpop.xlane.xlu0 %921 }
 0x1bd   : > { %v2735_v35 = vadd.f32 %v2717_v29, %v922_v20  ;;  %v1062_v52 = vrot.slane %v2732_v7, %v2747_v40 }
 0x1be   : > { %v931_v6 = vpop.xlane.xlu1 %930 }
 0x1bf   : > { %v2720_v30 = vadd.f32 %v2717_v29, %v931_v6  ;;  %v1049_v46 = vrot.slane %v2735_v35, %v2729_v15 }
 0x1c0   : > { %v925_v22 = vpop.xlane.xlu0 %924 }
 0x1c1   : > { %v2741_v38 = vadd.f32 %v2717_v29, %v925_v22  ;;  %v1066_v19 = vrot.slane %v2720_v30, %v2729_v15  ;;  %v1051_v57 = vsel %vm1050_vm4, %v1049_v46, %v1044_v51 }
 0x1c2   : > { %v934_v13 = vpop.xlane.xlu1 %933 }
 0x1c3   : > { %v2723_v31 = vadd.f32 %v2717_v29, %v934_v13  ;;  %v1056_v48 = vrot.slane %v2741_v38, %v2738_v36  ;;  %v1067_v53 = vsel %vm1050_vm4, %v1066_v19, %v1062_v52 }
 0x1c4   : > { %v937_v62 = vpop.xlane.xlu0 %936 }
 0x1c5   : > { %v2744_v39 = vadd.f32 %v2717_v29, %v937_v62  ;;  %v1071_v45 = vrot.slane %v2723_v31, %v2738_v36  ;;  %v1058_v60 = vsel %vm1057_vm5, %v1056_v48, %v1051_v57 }
 0x1c6   : > { %v940_v18 = vpop.xlane.xlu1 %939 }
 0x1c7   : > { %v2726_v32 = vadd.f32 %v2717_v29, %v940_v18  ;;  %v1076_v49 = vrot.slane %v2744_v39, %v2747_v40  ;;  %v1072_v54 = vsel %vm1057_vm5, %v1071_v45, %v1067_v53 }
 0x1c8   : > { %v943_v24 = vpop.xlane.xlu0 %942  ;;  %v1158_v0 = vsel %vm1157_vm6, %v1072_v54, %v1058_v60 }
 0x1c9   : > { %v2755_v44 = vadd.f32 %v2717_v29, %v943_v24  ;;  %v1080_v42 = vrot.slane %v2726_v32, %v2729_v15 }
 0x1ca   : > { %v946_v3 = vpop.xlane.xlu1 %945 }
 0x1cb   : > { %v2773_v50 = vadd.f32 %v2717_v29, %v946_v3  ;;  %v1085_v5 = vrot.slane %v2755_v44, %v2738_v36  ;;  %v1081_v55 = vsel %vm1050_vm4, %v1080_v42, %v1076_v49 }
 0x1cc   : > { %v961_v25 = vpop.xlane.xlu0 %960 }
 0x1cd   : > { %v1090_v61 = vrot.slane %v2773_v50, %v2747_v40  ;;  %v2795_v9 = vadd.f32 %v2717_v29, %v961_v25  ;;  %v1086_v2 = vsel %vm1057_vm5, %v1085_v5, %v1081_v55 }
 0x1ce   : > { %v952_v41 = vpop.xlane.xlu1 %951 }
 0x1cf   : > { %v2789_v58 = vadd.f32 %v2717_v29, %v952_v41  ;;  %v1160_v41 = vsel %vm1159_vm7, %v1086_v2, %v1158_v0  ;;  %v2359_v0 = vmov 0   ;;  %v1183_v2 = vsub.s32 1, %v2590_v12 }
 0x1d0   : > { %v949_v26 = vpop.xlane.xlu0 %948  ;;  %2147 = vset.pattern.permute.xlu0 %v2359_v0  ;;  %2146 = vset.pattern.permute.xlu1 %v2359_v0 }
 0x1d1   : > { %v2762_v14 = vadd.f32 %v2717_v29, %v949_v26  ;;  %v1099_v62 = vrot.slane %v2789_v58, %v2738_v36  ;;  %v1113_v26 = vrot.slane %v2795_v9, %v2738_v36 }
 0x1d2   : > { %v2715_v1 = vpop.xlane.xlu1 %969 }
 0x1d3   : > { %v1094_v21 = vrot.slane %v2762_v14, %v2729_v15  ;;  %v2821_v18 = vadd.f32 %v2717_v29, %v2715_v1 }
 0x1d4   : > { %v955_v27 = vpop.xlane.xlu0 %954 }
 0x1d5   : > { %v2803_v4 = vadd.f32 %v2717_v29, %v955_v27  ;;  %v1095_v11 = vsel %vm1050_vm4, %v1094_v21, %v1090_v61  ;;  %v1127_v52 = vrot.slane %v2821_v18, %v2738_v36 }
 0x1d6   : > { %v976_v33 = vpop.xlane.xlu1 %975  ;;  %v1100_v1 = vsel %vm1057_vm5, %v1099_v62, %v1095_v11  ;;  %v1191_v62 = vsub.s32 3, %v2590_v12 }
 0x1d7   : > { %v2824_v24 = vadd.f32 %v2717_v29, %v976_v33  ;;  %v1104_v27 = vrot.slane %v2803_v4, %v2747_v40  ;;  %v1162_v53 = vsel %vm1161_vm8, %v1100_v1, %v1160_v41 }
 0x1d8   : > { %v967_v63 = vpop.xlane.xlu0 %966 }
 0x1d9   : > { %v2798_v34 = vadd.f32 %v2717_v29, %v967_v63  ;;  %v1136_v46 = vrot.slane %v2824_v24, %v2729_v15 }
 0x1da   : > { %v964_v37 = vpop.xlane.xlu1 %963 }
 0x1db   : > { %v2785_v56 = vadd.f32 %v2717_v29, %v964_v37  ;;  %v1122_v10 = vrot.slane %v2798_v34, %v2729_v15 }
 0x1dc   : > { %v973_v47 = vpop.xlane.xlu0 %972 }
 0x1dd   : > { %v2806_v8 = vadd.f32 %v2717_v29, %v973_v47  ;;  %v1118_v20 = vrot.slane %v2785_v56, %v2747_v40 }
 0x1de   : > { %v982_v16 = vpop.xlane.xlu1 %981 }
 0x1df   : > { %v2812_v6 = vadd.f32 %v2717_v29, %v982_v16  ;;  %v1132_v28 = vrot.slane %v2806_v8, %v2747_v40  ;;  %v1123_v63 = vsel %vm1050_vm4, %v1122_v10, %v1118_v20  ;;  %v1195_v10 = vsub.s32 4, %v2590_v12 }
 0x1e0   : > { %v979_v59 = vpop.xlane.xlu0 %978  ;;  %v1128_v55 = vsel %vm1057_vm5, %v1127_v52, %v1123_v63 }
 0x1e1   : > { %v2815_v22 = vadd.f32 %v2717_v29, %v979_v59  ;;  %v1146_v19 = vrot.slane %v2812_v6, %v2747_v40  ;;  %v1137_v5 = vsel %vm1050_vm4, %v1136_v46, %v1132_v28 }
 0x1e2   : > { %v958_v13 = vpop.xlane.xlu1 %957 }
 0x1e3   : > { %v2827_v3 = vadd.f32 %v2717_v29, %v958_v13  ;;  %v1141_v45 = vrot.slane %v2815_v22, %v2738_v36 }
 0x1e4   : > { %v985_v25 = vpop.xlane.xlu0 %984 }
 0x1e5   : > { %v2835_v17 = vadd.f32 %v2717_v29, %v985_v25  ;;  %v1108_v33 = vrot.slane %v2827_v3, %v2729_v15 }
 0x1e6   : > { %v988_v37 = vpop.xlane.xlu1 %987 }
 0x1e7   : > { %v1150_v42 = vrot.slane %v2835_v17, %v2729_v15  ;;  %v1109_v47 = vsel %vm1050_vm4, %v1108_v33, %v1104_v27  ;;  %v2857_v48 = vadd.f32 %v2717_v29, %v988_v37  ;;  %v1142_v29 = vsel %vm1057_vm5, %v1141_v45, %v1137_v5 }
 0x1e8   : > { %v1114_v49 = vsel %vm1057_vm5, %v1113_v26, %v1109_v47 }
 0x1e9   : > { %v1151_v51 = vsel %vm1050_vm4, %v1150_v42, %v1146_v19  ;;  %v1155_v54 = vrot.slane %v2857_v48, %v2738_v36  ;;  %v1164_v21 = vsel %vm1163_vm9, %v1114_v49, %v1162_v53  ;;  %v1199_v42 = vsub.s32 5, %v2590_v12 }
 0x1ea   : > { %v1166_v16 = vsel %vm1165_vm10, %v1128_v55, %v1164_v21 }
 0x1eb   : > { %v1156_v57 = vsel %vm1057_vm5, %v1155_v54, %v1151_v51  ;;  %v1168_v59 = vsel %vm1167_vm11, %v1142_v29, %v1166_v16  ;;  %v3245_v16 = vsub.s32 7, %v2590_v12 }
 0x1ec   : > { %v1170_v60 = vsel %vm1169_vm12, %v1156_v57, %v1168_v59 }
 0x1ed   : > { %v1173_v61 = vsel %vm1172_vm13, %v1170_v60, -inf  ;;  %1823 = vst.msk [vmem:[%s2876_s25] sm:$0xff] %vm1172_vm13, %v1170_v60 }
 0x1ee   : > { %1174 = vmax.xlane.f32.xlu0 %v1173_v61 }
 0x277   : > { %v1175_v11 = vpop.xlane.xlu0 %1174 }
 0x278   : > { %v1180_v20 = vrot.slane %v1175_v11, %v2602_v23  ;;  %v1184_v13 = vrot.slane %v1175_v11, %v1183_v2  ;;  %v2891_v1 = vrot.slane %v1175_v11, %v1191_v62 }
 0x27a   : > { %v1217_v25 = vsub.f32 %v2750_v43, %v1180_v20  ;;  %v1218_v41 = vsub.f32 %v2735_v35, %v1180_v20  ;;  %v1220_v26 = vsub.f32 %v2732_v7, %v1184_v13  ;;  %v1221_v33 = vsub.f32 %v2720_v30, %v1184_v13 }
 0x27b   : > { %v2896_v43 = vrot.slane %v1175_v11, %v1195_v10  ;;  %v1227_v7 = vsub.f32 %v2762_v14, %v2891_v1  ;;  %v3244_v35 = vsub.s32 2, %v2590_v12  ;;  %v1219_v19 = vsub.f32 %v2741_v38, %v1180_v20 }
 0x27c   : > { %v1241_v27 = vmul.f32 1.442695, %v1217_v25  ;;  %v1243_v28 = vmul.f32 1.442695, %v1218_v41  ;;  %v1247_v63 = vmul.f32 1.442695, %v1220_v26  ;;  %v1222_v46 = vsub.f32 %v2723_v31, %v1184_v13 }
 0x27d   : > { %v1249_v45 = vmul.f32 1.442695, %v1221_v33  ;;  %v1229_v30 = vsub.f32 %v2803_v4, %v2896_v43  ;;  %v1261_v37 = vmul.f32 1.442695, %v1227_v7  ;;  %v1188_v52 = vrot.slane %v1175_v11, %v3244_v35 }
 0x27e   : > { %2155 = vpow2.f32 %v1241_v27  ;;  %v1245_v47 = vmul.f32 1.442695, %v1219_v19  ;;  %v3246_v14 = vsub.s32 6, %v2590_v12  ;;  %v2911_v38 = vrot.slane %v1175_v11, %v1199_v42 }
 0x27f   : > { %2157 = vpow2.f32 %v1243_v28  ;;  %v1231_v49 = vsub.f32 %v2795_v9, %v2896_v43  ;;  %v1265_v51 = vmul.f32 1.442695, %v1229_v30  ;;  %v1223_v4 = vsub.f32 %v2744_v39, %v1188_v52 }
 0x280   : > { %2159 = vpow2.f32 %v1247_v63  ;;  %v1251_v53 = vmul.f32 1.442695, %v1222_v46  ;;  %v2922_v54 = vrot.slane %v1175_v11, %v3246_v14  ;;  %v1233_v55 = vsub.f32 %v2798_v34, %v2911_v38 }
 0x281   : > { %2161 = vpow2.f32 %v1249_v45  ;;  %v1269_v21 = vmul.f32 1.442695, %v1231_v49  ;;  %v1224_v39 = vsub.f32 %v2726_v32, %v1188_v52  ;;  %v1253_v9 = vmul.f32 1.442695, %v1223_v4 }
 0x282   : > { %2163 = vpow2.f32 %v1261_v37  ;;  %v1235_v57 = vsub.f32 %v2806_v8, %v2922_v54  ;;  %v1273_v59 = vmul.f32 1.442695, %v1233_v55  ;;  %v1225_v34 = vsub.f32 %v2755_v44, %v1188_v52 }
 0x283   : > { %2165 = vpow2.f32 %v1245_v47  ;;  %v1255_v60 = vmul.f32 1.442695, %v1224_v39  ;;  %v2940_v32 = vrot.slane %v1175_v11, %v3245_v16  ;;  %v1237_v0 = vsub.f32 %v2815_v22, %v2922_v54 }
 0x284   : > { %2167 = vpow2.f32 %v1265_v51  ;;  %v1277_v20 = vmul.f32 1.442695, %v1235_v57  ;;  %v1226_v44 = vsub.f32 %v2773_v50, %v2891_v1  ;;  %v1257_v13 = vmul.f32 1.442695, %v1225_v34 }
 0x285   : > { %2169 = vpow2.f32 %v1251_v53  ;;  %v1239_v11 = vsub.f32 %v2835_v17, %v2940_v32  ;;  %v1281_v22 = vmul.f32 1.442695, %v1237_v0  ;;  %v1228_v26 = vsub.f32 %v2789_v58, %v2891_v1 }
 0x286   : > { %2171 = vpow2.f32 %v1269_v21  ;;  %v1259_v50 = vmul.f32 1.442695, %v1226_v44  ;;  %v1230_v33 = vsub.f32 %v2827_v3, %v2896_v43  ;;  %v1232_v7 = vsub.f32 %v2785_v56, %v2911_v38 }
 0x287   : > { %2173 = vpow2.f32 %v1253_v9  ;;  %v1285_v28 = vmul.f32 1.442695, %v1239_v11  ;;  %v1263_v63 = vmul.f32 1.442695, %v1228_v26  ;;  %v1234_v43 = vsub.f32 %v2821_v18, %v2911_v38 }
 0x288   : > { %2175 = vpow2.f32 %v1273_v59  ;;  %v1267_v19 = vmul.f32 1.442695, %v1230_v33  ;;  %v1271_v30 = vmul.f32 1.442695, %v1232_v7  ;;  %v1236_v52 = vsub.f32 %v2824_v24, %v2922_v54 }
 0x289   : > { %2177 = vpow2.f32 %v1255_v60  ;;  %v1275_v46 = vmul.f32 1.442695, %v1234_v43  ;;  %v1238_v38 = vsub.f32 %v2812_v6, %v2940_v32  ;;  %v1240_v24 = vsub.f32 %v2857_v48, %v2940_v32 }
 0x28a   : > { %2179 = vpow2.f32 %v1277_v20  ;;  %v1279_v49 = vmul.f32 1.442695, %v1236_v52 }
 0x28b   : > { %v2916_v5 = vpop.eup %2155  ;;  %2181 = vpow2.f32 %v1257_v13  ;;  %v1283_v4 = vmul.f32 1.442695, %v1238_v38  ;;  %v1287_v54 = vmul.f32 1.442695, %v1240_v24 }
 0x28c   : > { %v2918_v31 = vpop.eup %2157  ;;  %1314 = vperm.xlu1 %2146, %v2916_v5   ;;  %2183 = vpow2.f32 %v1281_v22 }
 0x28d   : > { %1317 = vperm.xlu0 %2147, %v2918_v31   ;;  %v2929_v29 = vpop.eup %2159  ;;  %2185 = vpow2.f32 %v1259_v50 }
 0x28e   : > { %v2936_v61 = vpop.eup %2161  ;;  %2187 = vpow2.f32 %v1285_v28 }
 0x28f   : > { %v2945_v8 = vpop.eup %2163  ;;  %2189 = vpow2.f32 %v1263_v63 }
 0x290   : > { %1323 = vperm.xlu1 %2146, %v2929_v29   ;;  %v2950_v25 = vpop.eup %2165  ;;  %2191 = vpow2.f32 %v1267_v19 }
 0x291   : > { %1344 = vperm.xlu0 %2147, %v2945_v8   ;;  %v2955_v41 = vpop.eup %2167  ;;  %2193 = vpow2.f32 %v1271_v30 }
 0x292   : > { %v2960_v27 = vpop.eup %2169  ;;  %2195 = vpow2.f32 %v1275_v46 }
 0x293   : > { %v2963_v17 = vpop.eup %2171  ;;  %2197 = vpow2.f32 %v1279_v49 }
 0x294   : > { %1326 = vperm.xlu1 %2146, %v2936_v61   ;;  %v2968_v58 = vpop.eup %2173  ;;  %2199 = vpow2.f32 %v1283_v4 }
 0x295   : > { %1350 = vperm.xlu0 %2147, %v2955_v41   ;;  %v2971_v1 = vpop.eup %2175  ;;  %2201 = vpow2.f32 %v1287_v54 }
 0x296   : > { %v2976_v45 = vpop.eup %2177 }
 0x297   : > { %v2979_v3 = vpop.eup %2179 }
 0x298   : > { %1320 = vperm.xlu1 %2146, %v2950_v25   ;;  %v2984_v37 = vpop.eup %2181 }
 0x299   : > { %1356 = vperm.xlu0 %2147, %v2963_v17   ;;  %v2987_v56 = vpop.eup %2183 }
 0x29a   : > { %v2992_v47 = vpop.eup %2185 }
 0x29b   : > { %v2995_v18 = vpop.eup %2187 }
 0x29c   : > { %1329 = vperm.xlu1 %2146, %v2960_v27   ;;  %v3000_v51 = vpop.eup %2189 }
 0x29d   : > { %1362 = vperm.xlu0 %2147, %v2971_v1   ;;  %v3005_v53 = vpop.eup %2191 }
 0x29e   : > { %v3008_v6 = vpop.eup %2193 }
 0x29f   : > { %v3011_v55 = vpop.eup %2195 }
 0x2a0   : > { %1332 = vperm.xlu1 %2146, %v2968_v58   ;;  %v3014_v21 = vpop.eup %2197 }
 0x2a1   : > { %1368 = vperm.xlu0 %2147, %v2979_v3   ;;  %v3017_v48 = vpop.eup %2199 }
 0x2a2   : > { %v3020_v39 = vpop.eup %2201 }
 0x2a4   : > { %1335 = vperm.xlu1 %2146, %v2976_v45  }
 0x2a5   : > { %1374 = vperm.xlu0 %2147, %v2987_v56  }
 0x2a8   : > { %1338 = vperm.xlu1 %2146, %v2984_v37  }
 0x2a9   : > { %1380 = vperm.xlu0 %2147, %v2995_v18  }
 0x2ac   : > { %1341 = vperm.xlu1 %2146, %v2992_v47  }
 0x2b0   : > { %1347 = vperm.xlu1 %2146, %v3000_v51  }
 0x2b4   : > { %1353 = vperm.xlu1 %2146, %v3005_v53  }
 0x2b8   : > { %1359 = vperm.xlu1 %2146, %v3008_v6  }
 0x2bc   : > { %1365 = vperm.xlu1 %2146, %v3011_v55  }
 0x2c0   : > { %1371 = vperm.xlu1 %2146, %v3014_v21  }
 0x2c4   : > { %1377 = vperm.xlu1 %2146, %v3017_v48  }
 0x2c8   : > { %1383 = vperm.xlu1 %2146, %v3020_v39  }
 0x307   : > { %v1315_v9 = vpop.permute.xlu1 %1314 }
 0x308   : > { %v1318_v60 = vpop.permute.xlu0 %1317  ;;  %v1388_v43 = vrot.slane %v1315_v9, %v2747_v40 }
 0x309   : > { %v1392_v19 = vrot.slane %v1318_v60, %v2729_v15 }
 0x30b   : > { %v1324_v57 = vpop.permute.xlu1 %1323  ;;  %v1393_v35 = vsel %vm1050_vm4, %v1392_v19, %v1388_v43 }
 0x30c   : > { %v1345_v20 = vpop.permute.xlu0 %1344  ;;  %v1402_v46 = vrot.slane %v1324_v57, %v2747_v40 }
 0x30f   : > { %v1327_v59 = vpop.permute.xlu1 %1326 }
 0x310   : > { %v1351_v13 = vpop.permute.xlu0 %1350  ;;  %v1406_v30 = vrot.slane %v1327_v59, %v2729_v15 }
 0x311   : > { %v1444_v57 = vrot.slane %v1351_v13, %v2747_v40 }
 0x312   : > { %v1407_v60 = vsel %vm1050_vm4, %v1406_v30, %v1402_v46 }
 0x313   : > { %v1321_v34 = vpop.permute.xlu1 %1320 }
 0x314   : > { %v1357_v26 = vpop.permute.xlu0 %1356  ;;  %v1397_v38 = vrot.slane %v1321_v34, %v2738_v36 }
 0x317   : > { %v1330_v32 = vpop.permute.xlu1 %1329 }
 0x318   : > { %v1363_v28 = vpop.permute.xlu0 %1362  ;;  %v1411_v49 = vrot.slane %v1330_v32, %v2738_v36 }
 0x31a   : > { %v1412_v19 = vsel %vm1057_vm5, %v1411_v49, %v1407_v60 }
 0x31b   : > { %v1333_v0 = vpop.permute.xlu1 %1332 }
 0x31c   : > { %v1369_v7 = vpop.permute.xlu0 %1368  ;;  %v1416_v34 = vrot.slane %v1333_v0, %v2747_v40 }
 0x31f   : > { %v1336_v44 = vpop.permute.xlu1 %1335 }
 0x320   : > { %v1375_v24 = vpop.permute.xlu0 %1374  ;;  %v1420_v4 = vrot.slane %v1336_v44, %v2729_v15  ;;  %v1434_v44 = vrot.slane %v1345_v20, %v2729_v15 }
 0x321   : > { %v1481_v49 = vrot.slane %v1375_v24, %v2738_v36 }
 0x323   : > { %v1339_v11 = vpop.permute.xlu1 %1338 }
 0x324   : > { %v1425_v9 = vrot.slane %v1339_v11, %v2738_v36  ;;  %v1472_v11 = vrot.slane %v1369_v7, %v2747_v40 }
 0x327   : > { %v1342_v22 = vpop.permute.xlu1 %1341 }
 0x328   : > { %v1430_v59 = vrot.slane %v1342_v22, %v2747_v40  ;;  %v1421_v22 = vsel %vm1050_vm4, %v1420_v4, %v1416_v34 }
 0x329   : > { %v1426_v20 = vsel %vm1057_vm5, %v1425_v9, %v1421_v22 }
 0x32b   : > { %v1348_v50 = vpop.permute.xlu1 %1347 }
 0x32c   : > { %v1439_v32 = vrot.slane %v1348_v50, %v2738_v36  ;;  %v1453_v50 = vrot.slane %v1357_v26, %v2738_v36 }
 0x32f   : > { %v1354_v33 = vpop.permute.xlu1 %1353 }
 0x330   : > { %v1448_v54 = vrot.slane %v1354_v33, %v2729_v15  ;;  %v1398_v33 = vsel %vm1057_vm5, %v1397_v38, %v1393_v35  ;;  %v1435_v35 = vsel %vm1050_vm4, %v1434_v44, %v1430_v59 }
 0x331   : > { %v1497_v46 = vsel %vm1157_vm6, %v1412_v19, %v1398_v33  ;;  %v1440_v7 = vsel %vm1057_vm5, %v1439_v32, %v1435_v35 }
 0x332   : > { %v1449_v13 = vsel %vm1050_vm4, %v1448_v54, %v1444_v57  ;;  %v1498_v4 = vsel %vm1159_vm7, %v1426_v20, %v1497_v46 }
 0x333   : > { %v1360_v63 = vpop.permute.xlu1 %1359  ;;  %v1499_v9 = vsel %vm1161_vm8, %v1440_v7, %v1498_v4 }
 0x334   : > { %v1458_v43 = vrot.slane %v1360_v63, %v2747_v40  ;;  %v1381_v63 = vpop.permute.xlu0 %1380 }
 0x335   : > { %v1490_v60 = vrot.slane %v1381_v63, %v2729_v15 }
 0x337   : > { %v1366_v52 = vpop.permute.xlu1 %1365 }
 0x338   : > { %v1467_v0 = vrot.slane %v1366_v52, %v2738_v36  ;;  %v1454_v52 = vsel %vm1057_vm5, %v1453_v50, %v1449_v13 }
 0x339   : > { %v1500_v24 = vsel %vm1163_vm9, %v1454_v52, %v1499_v9 }
 0x33b   : > { %v1372_v16 = vpop.permute.xlu1 %1371 }
 0x33c   : > { %v1476_v14 = vrot.slane %v1372_v16, %v2729_v15  ;;  %v1462_v16 = vrot.slane %v1363_v28, %v2729_v15 }
 0x33e   : > { %v1477_v38 = vsel %vm1050_vm4, %v1476_v14, %v1472_v11  ;;  %v1463_v26 = vsel %vm1050_vm4, %v1462_v16, %v1458_v43 }
 0x33f   : > { %v1378_v30 = vpop.permute.xlu1 %1377  ;;  %v1468_v54 = vsel %vm1057_vm5, %v1467_v0, %v1463_v26  ;;  %v1482_v57 = vsel %vm1057_vm5, %v1481_v49, %v1477_v38 }
 0x340   : > { %v1486_v28 = vrot.slane %v1378_v30, %v2747_v40  ;;  %v1501_v32 = vsel %vm1165_vm10, %v1468_v54, %v1500_v24 }
 0x341   : > { %v1502_v44 = vsel %vm1167_vm11, %v1482_v57, %v1501_v32 }
 0x342   : > { %v1491_v34 = vsel %vm1050_vm4, %v1490_v60, %v1486_v28 }
 0x343   : > { %v1384_v59 = vpop.permute.xlu1 %1383 }
 0x344   : > { %v1495_v14 = vrot.slane %v1384_v59, %v2738_v36 }
 0x346   : > { %v1496_v40 = vsel %vm1057_vm5, %v1495_v14, %v1491_v34 }
 0x347   : > { %v1503_v33 = vsel %vm1169_vm12, %v1496_v40, %v1502_v44 }
 0x348   : > { %v1505_v15 = vsel %vm1172_vm13, %v1503_v33, 0.0 }
 0x349   : > { %1506 = vadd.xlane.f32.xlu0 %v1505_v15 }
 0x3d2   : > { %v1507_v19 = vpop.xlane.xlu0 %1506 }
 0x3d3   : > { %2203 = vrcp.f32 %v1507_v19 }
 0x3e0   : > { %v2204_v43 = vpop.eup %2203 }
 0x3e1   : > { %v1525_v36 = vrot.slane %v2204_v43, %v1191_v62  ;;  %v1513_v11 = vrot.slane %v2204_v43, %v2602_v23  ;;  %v1533_v0 = vrot.slane %v2204_v43, %v1199_v42  ;;  %v1529_v20 = vrot.slane %v2204_v43, %v1195_v10 }
 0x3e2   : > { %v1517_v62 = vrot.slane %v2204_v43, %v1183_v2  ;;  %v3256_v42 = vsub.s32 6, %v2590_v12  ;;  %v3257_v10 = vsub.s32 7, %v2590_v12  ;;  %v3258_v2 = vsub.s32 2, %v2590_v12 }
 0x3e3   : > { %v1559_v22 = vmul.f32 %v2992_v47, %v1525_v36  ;;  %v1550_v13 = vmul.f32 %v2916_v5, %v1513_v11  ;;  %v1565_v50 = vmul.f32 %v3008_v6, %v1533_v0  ;;  %v1551_v16 = vmul.f32 %v2918_v31, %v1513_v11 }
 0x3e4   : > { %v1564_v23 = vmul.f32 %v2963_v17, %v1529_v20  ;;  %v1553_v5 = vmul.f32 %v2929_v29, %v1517_v62  ;;  %v1537_v47 = vrot.slane %v2204_v43, %v3256_v42  ;;  %v1554_v31 = vmul.f32 %v2936_v61, %v1517_v62 }
 0x3e5   : > { %1621 = vperm.xlu0 %2147, %v1559_v22   ;;  %1576 = vperm.xlu1 %2146, %v1550_v13   ;;  %v1541_v35 = vrot.slane %v2204_v43, %v3257_v10  ;;  %v1521_v30 = vrot.slane %v2204_v43, %v3258_v2  ;;  %v1552_v61 = vmul.f32 %v2950_v25, %v1513_v11 }
 0x3e6   : > { %v1569_v6 = vmul.f32 %v3014_v21, %v1537_v47  ;;  %v1570_v46 = vmul.f32 %v2987_v56, %v1537_v47  ;;  %v1555_v12 = vmul.f32 %v2960_v27, %v1517_v62  ;;  %v1560_v63 = vmul.f32 %v2945_v8, %v1525_v36 }
 0x3e7   : > { %v1571_v17 = vmul.f32 %v3017_v48, %v1541_v35  ;;  %v1556_v29 = vmul.f32 %v2968_v58, %v1521_v30  ;;  %v1557_v21 = vmul.f32 %v2976_v45, %v1521_v30  ;;  %v1558_v48 = vmul.f32 %v2984_v37, %v1521_v30 }
 0x3e8   : > { %v1562_v58 = vmul.f32 %v2955_v41, %v1529_v20  ;;  %v1563_v45 = vmul.f32 %v3005_v53, %v1529_v20  ;;  %v1561_v25 = vmul.f32 %v3000_v51, %v1525_v36  ;;  %v1566_v27 = vmul.f32 %v2971_v1, %v1533_v0 }
 0x3e9   : > { %1651 = vperm.xlu0 %2147, %v1565_v50   ;;  %1581 = vperm.xlu1 %2146, %v1551_v16   ;;  %v1568_v8 = vmul.f32 %v2979_v3, %v1537_v47  ;;  %v1567_v41 = vmul.f32 %v3011_v55, %v1533_v0  ;;  %v1572_v37 = vmul.f32 %v2995_v18, %v1541_v35 }
 0x3ea   : > { %v1573_v56 = vmul.f32 %v3020_v39, %v1541_v35 }
 0x3ed   : > { %1646 = vperm.xlu0 %2147, %v1564_v23   ;;  %1591 = vperm.xlu1 %2146, %v1553_v5  }
 0x3f1   : > { %1671 = vperm.xlu0 %2147, %v1569_v6   ;;  %1596 = vperm.xlu1 %2146, %v1554_v31  }
 0x3f5   : > { %1681 = vperm.xlu0 %2147, %v1571_v17   ;;  %1606 = vperm.xlu1 %2146, %v1556_v29  }
 0x3f9   : > { %1676 = vperm.xlu0 %2147, %v1570_v46   ;;  %1611 = vperm.xlu1 %2146, %v1557_v21  }
 0x3fd   : > { %1586 = vperm.xlu1 %2146, %v1552_v61  }
 0x401   : > { %1601 = vperm.xlu1 %2146, %v1555_v12  }
 0x405   : > { %1626 = vperm.xlu1 %2146, %v1560_v63  }
 0x409   : > { %1616 = vperm.xlu1 %2146, %v1558_v48  }
 0x40d   : > { %1636 = vperm.xlu1 %2146, %v1562_v58  }
 0x411   : > { %1641 = vperm.xlu1 %2146, %v1563_v45  }
 0x415   : > { %1631 = vperm.xlu1 %2146, %v1561_v25  }
 0x419   : > { %1656 = vperm.xlu1 %2146, %v1566_v27  }
 0x41d   : > { %1666 = vperm.xlu1 %2146, %v1568_v8  }
 0x421   : > { %1661 = vperm.xlu1 %2146, %v1567_v41  }
 0x425   : > { %1686 = vperm.xlu1 %2146, %v1572_v37  }
 0x429   : > { %1691 = vperm.xlu1 %2146, %v1573_v56  }
 0x42a   : > { %2270 = shalt.err (!%p2267_p0)
}
 0x42b   : > { %s2271_s24 = scalar_lea.hbm %s1854_s16, 128  ;;  %s2275_s21 = scalar_lea.hbm %s3241_s8, 256 }
 0x42c   : > { %p2272_p2 = scmp.ne.s32.totalorder %s1854_s16, %s2271_s24  ;;  %p2276_p3 = scmp.lt.s32.totalorder %s1854_s16, %s3241_s8 }
 0x42d   : > { %p2277_p6 = scmp.lt.s32.totalorder %s2275_s21, %s2271_s24 }
 0x42e   : > { %p2273_p9 = pnand %p2272_p2, %p3259_p13 }
 0x42f   : > { %p2278_p11 = por %p2277_p6, %p2276_p3 }
 0x430   : > { %p2274_p1 = pneg %p2273_p9 }
 0x432   : > { %p2279_p12 = pnand %p2278_p11, %p2274_p1 }
 0x434   : > { %2282 = shalt.err (!%p2279_p12)
}
 0x435   : > { %2092 = dma.vmem_to_hbm [thread:$0]  (%p3259_p13), %s1857_s26, 128, %s1854_s16, %s1830_s13   ;;  %v2205_v4 = vld [vmem:[%s2505_s19 + $0x20] sm:$0xff]  ;;  %v2206_v60 = vld [vmem:[%s2505_s19 + $0x38] sm:$0xff]  ;;  %v2207_v57 = vld [vmem:[%s2505_s19 + $0x8] sm:$0xff] }
 0x436   : > { %v2208_v24 = vld [vmem:[%s2505_s19 + $0x18] sm:$0xff]  ;;  %v2209_v32 = vld [vmem:[%s2505_s19 + $0x28] sm:$0xff]  ;;  %v2210_v33 = vld [vmem:[%s2505_s19 + $0x30] sm:$0xff]  ;;  %s3260_s0 = sshll.u32 %s2501_s20, 3  ;;  %s3261_s27 = sshll.u32 %s2431_s6, 7 }
 0x437   : > { %v2211_v19 = vld [vmem:[%s2505_s19 + $0x40] sm:$0xff]  ;;  %v2213_v13 = vld [vmem:[%s2505_s19 + $0x10] sm:$0xff]  ;;  %v2215_v20 = vld [vmem:[%s2505_s19 + $0x48] sm:$0xff]  ;;  %s3194_s13 = scalar_lea.hbm %s3240_s7, %s3261_s27  ;;  %s1825_s11 = scalar_lea.sflag [#allocation5], %s2501_s20 }
 0x438   : > { %v2212_v36 = vld [vmem:[%s2505_s19] sm:$0xff]  ;;  %v2214_v50 = vld [vmem:[%s2505_s19 + $0x50] sm:$0xff]  ;;  %v2216_v31 = vld [vmem:[%s2505_s19 + $0x68] sm:$0xff]  ;;  %s2361_s22 = smov [#allocation6]  }
 0x439   : > { %v2217_v17 = vld [vmem:[%s2505_s19 + $0x60] sm:$0xff]  ;;  %v2218_v41 = vld [vmem:[%s2505_s19 + $0x58] sm:$0xff]  ;;  %v2219_v56 = vld [vmem:[%s2505_s19 + $0x70] sm:$0xff]  ;;  %s2287_s23 = sshll.u32 %s2361_s22, 4  ;;  %s2288_s23 = int_to_ptr.vmem [resolvable:$false] %s2287_s23 }
 0x43a   : > { %s2289_s6 = scalar_lea.vmem %s2288_s23, 256 }
 0x460   : > { %v1577_v1 = vpop.permute.xlu1 %1576  ;;  %v1622_v39 = vpop.permute.xlu0 %1621 }
 0x461   : > { %v1694_v11 = vmul.f32 %v2212_v36, %v1577_v1  ;;  %v1703_v62 = vmul.f32 %v2215_v20, %v1622_v39 }
 0x463   : > { %v1718_v46 = vsel %vm481_vm0, %v1694_v11, 0.0  ;;  %v1751_v27 = vsel %vm481_vm0, %v1703_v62, 0.0 }
 0x464   : > { %v1582_v3 = vpop.permute.xlu1 %1581  ;;  %v3130_v49 = vpop.permute.xlu0 %1651 }
 0x465   : > { %v1695_v14 = vmul.f32 %v2207_v57, %v1582_v3  ;;  %v2221_v57 = vld [vmem:[%s2505_s19 + $0x80] sm:$0xff] }
 0x467   : > { %v1719_v42 = vsel %vm481_vm0, %v1695_v14, 0.0 }
 0x468   : > { %v1592_v18 = vpop.permute.xlu1 %1591  ;;  %v1647_v26 = vpop.permute.xlu0 %1646  ;;  %v1720_v63 = vadd.f32 %v1719_v42, %v1718_v46  ;;  %v2225_v42 = vld [vmem:[%s2505_s19 + $0x88] sm:$0xff] }
 0x469   : > { %v1697_v34 = vmul.f32 %v2208_v24, %v1592_v18  ;;  %v1708_v1 = vmul.f32 %v2219_v56, %v1647_v26 }
 0x46b   : > { %v1729_v47 = vsel %vm481_vm0, %v1697_v34, 0.0 }
 0x46c   : > { %v1597_v51 = vpop.permute.xlu1 %1596  ;;  %v1672_v44 = vpop.permute.xlu0 %1671 }
 0x46d   : > { %v1698_v54 = vmul.f32 %v2205_v4, %v1597_v51 }
 0x46f   : > { %v1730_v22 = vsel %vm481_vm0, %v1698_v54, 0.0 }
 0x470   : > { %v1607_v53 = vpop.permute.xlu1 %1606  ;;  %v1731_v35 = vadd.f32 %v1730_v22, %v1729_v47  ;;  %v1682_v48 = vpop.permute.xlu0 %1681 }
 0x471   : > { %v1700_v15 = vmul.f32 %v2210_v33, %v1607_v53  ;;  %v2223_v33 = vld [vmem:[%s2505_s19 + $0xa0] sm:$0xff] }
 0x473   : > { %v1740_v2 = vsel %vm481_vm0, %v1700_v15, 0.0 }
 0x474   : > { %v1612_v55 = vpop.permute.xlu1 %1611  ;;  %v1677_v4 = vpop.permute.xlu0 %1676 }
 0x475   : > { %v1701_v9 = vmul.f32 %v2206_v60, %v1612_v55  ;;  %v2220_v60 = vld [vmem:[%s2505_s19 + $0x98] sm:$0xff]  ;;  %v1714_v15 = vmul.f32 %v2223_v33, %v1677_v4 }
 0x477   : > { %v1741_v23 = vsel %vm481_vm0, %v1701_v9, 0.0  ;;  %v1713_v9 = vmul.f32 %v2220_v60, %v1672_v44 }
 0x478   : > { %v1587_v7 = vpop.permute.xlu1 %1586  ;;  %v1742_v21 = vadd.f32 %v1741_v23, %v1740_v2  ;;  %v1787_v23 = vsel %vm481_vm0, %v1714_v15, 0.0 }
 0x479   : > { %v1696_v0 = vmul.f32 %v2213_v13, %v1587_v7  ;;  %v1785_v13 = vsel %vm481_vm0, %v1713_v9, 0.0 }
 0x47b   : > { %v1721_v61 = vsel %vm481_vm0, %v1696_v0, 0.0 }
 0x47c   : > { %v1602_v38 = vpop.permute.xlu1 %1601  ;;  %v1722_v3 = vadd.f32 %v1721_v61, %v1720_v63  ;;  %v2226_v61 = vld [vmem:[%s2505_s19 + $0xa8] sm:$0xff] }
 0x47d   : > { %v1699_v40 = vmul.f32 %v2209_v32, %v1602_v38  ;;  %v2222_v32 = vld [vmem:[%s2505_s19 + $0x78] sm:$0xff] }
 0x47e   : > { %v1723_v54 = vrot.slane %v1722_v3, 4 }
 0x47f   : > { %v1732_v6 = vsel %vm481_vm0, %v1699_v40, 0.0  ;;  %v1709_v40 = vmul.f32 %v2222_v32, %v3130_v49 }
 0x480   : > { %v1627_v52 = vpop.permute.xlu1 %1626  ;;  %v1733_v58 = vadd.f32 %v1732_v6, %v1731_v35  ;;  %v1724_v11 = vadd.f32 %v1723_v54, %v1722_v3 }
 0x481   : > { %v1704_v16 = vmul.f32 %v2214_v50, %v1627_v52  ;;  %v1773_v49 = vsel %vm481_vm0, %v1709_v40, 0.0 }
 0x482   : > { %v1734_v39 = vrot.slane %v1733_v58, 4  ;;  %v1725_v6 = vrot.slane %v1724_v11, 2 }
 0x483   : > { %v1752_v12 = vsel %vm481_vm0, %v1704_v16, 0.0 }
 0x484   : > { %v1617_v28 = vpop.permute.xlu1 %1616  ;;  %v1753_v18 = vadd.f32 %v1752_v12, %v1751_v27  ;;  %v1735_v24 = vadd.f32 %v1734_v39, %v1733_v58  ;;  %v1715_v12 = vmul.f32 %v2226_v61, %v1682_v48  ;;  %v2227_v58 = vld [vmem:[%s2505_s19 + $0xb0] sm:$0xff] }
 0x485   : > { %v1702_v43 = vmul.f32 %v2211_v19, %v1617_v28  ;;  %v1765_v28 = vsel %vm481_vm0, %v1708_v1, 0.0 }
 0x486   : > { %v1736_v16 = vrot.slane %v1735_v24, 2 }
 0x487   : > { %v1743_v30 = vsel %vm481_vm0, %v1702_v43, 0.0  ;;  %v2224_v43 = vld [vmem:[%s2505_s19 + $0x90] sm:$0xff] }
 0x488   : > { %v1637_v59 = vpop.permute.xlu1 %1636  ;;  %v1744_v8 = vadd.f32 %v1743_v30, %v1742_v21 }
 0x489   : > { %v1706_v29 = vmul.f32 %v2217_v17, %v1637_v59  ;;  %v1737_v17 = vadd.f32 %v1736_v16, %v1735_v24 }
 0x48a   : > { %v1745_v52 = vrot.slane %v1744_v8, 4 }
 0x48b   : > { %v1762_v51 = vsel %vm481_vm0, %v1706_v29, 0.0  ;;  %v1738_v1 = vrot.slane %v1737_v17, 1 }
 0x48c   : > { %v1642_v5 = vpop.permute.xlu1 %1641  ;;  %v1746_v19 = vadd.f32 %v1745_v52, %v1744_v8 }
 0x48d   : > { %v1707_v10 = vmul.f32 %v2216_v31, %v1642_v5 }
 0x48e   : > { %v1747_v5 = vrot.slane %v1746_v19, 2 }
 0x48f   : > { %v1763_v45 = vsel %vm481_vm0, %v1707_v10, 0.0 }
 0x490   : > { %v1632_v25 = vpop.permute.xlu1 %1631  ;;  %v1764_v53 = vadd.f32 %v1763_v45, %v1762_v51  ;;  %v1748_v63 = vadd.f32 %v1747_v5, %v1746_v19  ;;  %v1795_v51 = vsel %vm481_vm0, %v1715_v12, 0.0 }
 0x491   : > { %v1705_v37 = vmul.f32 %v2218_v41, %v1632_v25  ;;  %v1726_v25 = vadd.f32 %v1725_v6, %v1724_v11 }
 0x492   : > { %v1766_v59 = vadd.f32 %v1765_v28, %v1764_v53  ;;  %v1749_v53 = vrot.slane %v1748_v63, 1 }
 0x493   : > { %v1754_v55 = vsel %vm481_vm0, %v1705_v37, 0.0 }
 0x494   : > { %v1755_v7 = vadd.f32 %v1754_v55, %v1753_v18  ;;  %v1657_v38 = vpop.permute.xlu1 %1656  ;;  %v1767_v0 = vrot.slane %v1766_v59, 4  ;;  %v2228_v55 = vld [vmem:[%s2505_s19 + $0xb8] sm:$0xff]  ;;  %s342_s19 = scalar_lea.vmem [#allocation6], %s3260_s0 }
 0x495   : > { %v1710_v14 = vmul.f32 %v2221_v57, %v1657_v38  ;;  %s1843_s24 = sshll.u32 %s342_s19, 4  ;;  %s1844_s24 = int_to_ptr.vmem [resolvable:$true] %s1843_s24 }
 0x496   : > { %v1756_v26 = vrot.slane %v1755_v7, 4  ;;  %v1768_v2 = vadd.f32 %v1767_v0, %v1766_v59  ;;  %v1750_v59 = vadd.f32 %v1749_v53, %v1748_v63  ;;  %s2283_s14 = scalar_lea.vmem %s1844_s24, 128  ;;  %p2290_p8 = scmp.lt.s32.totalorder %s1844_s24, %s2288_s23 }
 0x497   : > { %v1774_v44 = vsel %vm481_vm0, %v1710_v14, 0.0  ;;  %p2284_p4 = scmp.ne.s32.totalorder %s1844_s24, %s2283_s14  ;;  %p2291_p10 = scmp.lt.s32.totalorder %s2289_s6, %s2283_s14 }
 0x498   : > { %v1667_v34 = vpop.permute.xlu1 %1666  ;;  %v1757_v22 = vadd.f32 %v1756_v26, %v1755_v7  ;;  %v1775_v10 = vadd.f32 %v1774_v44, %v1773_v49  ;;  %v1769_v41 = vrot.slane %v1768_v2, 2  ;;  %v1727_v7 = vrot.slane %v1726_v25, 1 }
 0x499   : > { %v1712_v36 = vmul.f32 %v2224_v43, %v1667_v34  ;;  %v1739_v26 = vadd.f32 %v1738_v1, %v1737_v17  ;;  %p2285_p5 = pnand %p2284_p4, %p3259_p13  ;;  %p2292_p0 = por %p2291_p10, %p2290_p8 }
 0x49a   : > { %v1758_v31 = vrot.slane %v1757_v22, 2  ;;  %v1770_v28 = vadd.f32 %v1769_v41, %v1768_v2  ;;  %v1728_v57 = vadd.f32 %v1727_v7, %v1726_v25 }
 0x49b   : > { %v1784_v50 = vsel %vm481_vm0, %v1712_v36, 0.0  ;;  %p2286_p7 = pneg %p2285_p5 }
 0x49c   : > { %v1786_v20 = vadd.f32 %v1785_v13, %v1784_v50  ;;  %v1662_v62 = vpop.permute.xlu1 %1661  ;;  %v1759_v27 = vadd.f32 %v1758_v31, %v1757_v22  ;;  %v1771_v32 = vrot.slane %v1770_v28, 1  ;;  %v1814_v33 = vsel %vm1157_vm6, %v1739_v26, %v1728_v57 }
 0x49d   : > { %v1711_v47 = vmul.f32 %v2225_v42, %v1662_v62  ;;  %v1815_v19 = vsel %vm1159_vm7, %v1750_v59, %v1814_v33  ;;  %p2293_p2 = pnand %p2292_p0, %p2286_p7 }
 0x49e   : > { %v1788_v35 = vadd.f32 %v1787_v23, %v1786_v20  ;;  %v1760_v48 = vrot.slane %v1759_v27, 1  ;;  %v1772_v22 = vadd.f32 %v1771_v32, %v1770_v28 }
 0x49f   : > { %v1776_v30 = vsel %vm481_vm0, %v1711_v47, 0.0 }
 0x4a0   : > { %v1789_v29 = vrot.slane %v1788_v35, 4  ;;  %v1777_v46 = vadd.f32 %v1776_v30, %v1775_v10  ;;  %v1687_v21 = vpop.permute.xlu1 %1686  ;;  %v1761_v14 = vadd.f32 %v1760_v48, %v1759_v27 }
 0x4a1   : > { %v1716_v45 = vmul.f32 %v2227_v58, %v1687_v21 }
 0x4a2   : > { %v1778_v8 = vrot.slane %v1777_v46, 4  ;;  %v1790_v37 = vadd.f32 %v1789_v29, %v1788_v35  ;;  %v1816_v43 = vsel %vm1161_vm8, %v1761_v14, %v1815_v19 }
 0x4a3   : > { %v1796_v56 = vsel %vm481_vm0, %v1716_v45, 0.0  ;;  %v1817_v44 = vsel %vm1163_vm9, %v1772_v22, %v1816_v43 }
 0x4a4   : > { %v1779_v3 = vadd.f32 %v1778_v8, %v1777_v46  ;;  %v1692_v18 = vpop.permute.xlu1 %1691  ;;  %v1797_v52 = vadd.f32 %v1796_v56, %v1795_v51  ;;  %v1791_v4 = vrot.slane %v1790_v37, 2 }
 0x4a5   : > { %v1717_v39 = vmul.f32 %v2228_v55, %v1692_v18 }
 0x4a6   : > { %v1780_v38 = vrot.slane %v1779_v3, 2  ;;  %v1792_v40 = vadd.f32 %v1791_v4, %v1790_v37 }
 0x4a7   : > { %v1798_v54 = vsel %vm481_vm0, %v1717_v39, 0.0 }
 0x4a8   : > { %v1781_v60 = vadd.f32 %v1780_v38, %v1779_v3  ;;  %v1799_v9 = vadd.f32 %v1798_v54, %v1797_v52  ;;  %v1793_v13 = vrot.slane %v1792_v40, 1 }
 0x4aa   : > { %v1782_v24 = vrot.slane %v1781_v60, 1  ;;  %v1800_v34 = vrot.slane %v1799_v9, 4  ;;  %v1794_v20 = vadd.f32 %v1793_v13, %v1792_v40 }
 0x4ac   : > { %v1801_v15 = vadd.f32 %v1800_v34, %v1799_v9  ;;  %v1783_v36 = vadd.f32 %v1782_v24, %v1781_v60 }
 0x4ae   : > { %v1802_v11 = vrot.slane %v1801_v15, 2  ;;  %v1818_v50 = vsel %vm1165_vm10, %v1783_v36, %v1817_v44 }
 0x4af   : > { %v1819_v49 = vsel %vm1167_vm11, %v1794_v20, %v1818_v50 }
 0x4b0   : > { %v1803_v0 = vadd.f32 %v1802_v11, %v1801_v15 }
 0x4b2   : > { %v1804_v16 = vrot.slane %v1803_v0, 1 }
 0x4b4   : > { %v1805_v62 = vadd.f32 %v1804_v16, %v1803_v0 }
 0x4b6   : > { %v1820_v23 = vsel %vm1169_vm12, %v1805_v62, %v1819_v49 }
 0x4b7   : > { %1822 = vst.msk [vmem:[%s342_s19] sm:$0xff] %vm481_vm0, %v1820_v23 }
 0x4b8   : > { %2296 = shalt.err (!%p2293_p2)
}
 0x4b9   : > { %s2297_s25 = scalar_lea.hbm %s3194_s13, 128  ;;  %s2301_s21 = scalar_lea.hbm %s3240_s7, 256 }
 0x4ba   : > { %p2298_p9 = scmp.ne.s32.totalorder %s3194_s13, %s2297_s25  ;;  %p2302_p6 = scmp.lt.s32.totalorder %s3194_s13, %s3240_s7 }
 0x4bb   : > { %p2303_p11 = scmp.lt.s32.totalorder %s2301_s21, %s2297_s25 }
 0x4bc   : > { %p2299_p1 = pnand %p2298_p9, %p3259_p13 }
 0x4bd   : > { %p2304_p12 = por %p2303_p11, %p2302_p6 }
 0x4be   : > { %p2300_p3 = pneg %p2299_p1 }
 0x4c0   : > { %p2305_p4 = pnand %p2304_p12, %p2300_p3 }
 0x4c2   : > { %2308 = shalt.err (!%p2305_p4)
}
 0x4c3   : > { %2091 = dma.vmem_to_hbm [thread:$0]  (%p3259_p13), %s1844_s24, 128, %s3194_s13, %s1825_s11  }
 0x4c4 PF: > { %s1868_s27 = sand.u32 1, %s2339_s29   ;;  %p3262_p5 = scmp.ne.s32.totalorder %s3252_s18, 0 }
 0x4c5   : > { %p3263_p7 = scmp.ge.s32.totalorder %s2351_s10, 2  ;;  %s1869_s16 = scalar_lea.sflag [#allocation5], %s1868_s27 }
 0x4c7   : > { %p2100_p8 = pnand %p3263_p7, %p3262_p5 }
 0x4c9   : > { %p2101_p10 = pneg %p2100_p8 }
 0x4cb   : > { %2330 = dma.done.wait (%p2101_p10), %s1869_s16, 128  }
 0x4cc   : > { %2332 = vsyncadd (%p2101_p10), %s1869_s16, 4294967168  ;;  %s1878_s26 = scalar_lea.sflag [#allocation8], %s1868_s27 }
 0x4cd   : > { %2334 = dma.done.wait (%p2101_p10), %s1878_s26, 128  }
 0x4ce   : > { %2336 = vsyncadd (%p2101_p10), %s1878_s26, 4294967168  ;;  %p26_p13 = scmp.ge.s32.totalorder %s2435_s12, 4   ;;  %s3264_s29 = smov %s2343_s30 }
 0x4cf   : > { %s3265_s30 = smov %s2347_s9  ;;  %s3266_s9 = smov %s2447_s15 }
 0x4d0   : > { %s3267_s10 = smov %s2435_s12  ;;  %28 = sbr.rel (!%p26_p13) target bundleno = 10 (0xa), region = 113 }
 0x4d5   :  { %1883 = vsyncpa [#allocation4], 1 }
 0x4d6   :  { %1885 = vsyncpa [#allocation4 + $0x1], 1 }
 0x4d7   :  { %1886 = vsyncpa [#allocation5], 1 }
 0x4d8   :  { %1888 = vsyncpa [#allocation5 + $0x1], 1 }
 0x4d9   :  { %1889 = vsyncpa [#allocation8], 1 }
 0x4da   :  { %1891 = vsyncpa [#allocation8 + $0x1], 1 }

</bundles_post_ra>
